<compile_context>
chip_gen: v7x
topology: tpu7x:2x2x1
jax: 0.10.0
libtpu: 0.0.40
codegen_flags: <defaults>
</compile_context>

<pallas_src>
import jax
import jax.numpy as jnp
from jax.experimental import pallas as pl
from jax.experimental.pallas import tpu as pltpu

LANES = 128                                # pad Cout to this (lane-dense out)
_PALLAS_MIN_PIXELS = 64                    # below this per-image, XLA is faster
_PALLAS_MAX_OUT_VMEM = 16 * 1024 * 1024    # per-image output double-buffer cap


# ----------------------------------------------------------------------------
# Pallas kernel: fused 3x3 / stride-2 conv + bias + SiLU on one image.
# The im2col gather happens *inside* the kernel: each of the 9 taps is a
# contiguous window of one of the four stride-2 phase images, so no strided
# HBM loads and no inflated patches tensor are needed.
# ----------------------------------------------------------------------------
def _conv3x3_s2_silu_kernel(p00_ref, p01_ref, p10_ref, p11_ref,
                            w_ref, b_ref, o_ref):
    # p{a}{b}_ref : (1, OH+1, OW+1, Cin) bf16, phase[a][b][r,c] = x_pad[2r+a, 2c+b]
    # w_ref       : (9*Cin, LANES) bf16, tap-major rows ((ki*3+kj)*Cin + ci)
    # b_ref       : (1, LANES) f32
    # o_ref       : (1, OH, OW, LANES) f32
    oh = o_ref.shape[1]
    ow = o_ref.shape[2]
    cl = o_ref.shape[3]
    cin = p00_ref.shape[3]

    phase_refs = ((p00_ref, p01_ref),
                  (p10_ref, p11_ref))

    acc = jnp.zeros((oh * ow, cl), jnp.float32)
    for ki in range(3):                                       # static unroll (9 taps)
        for kj in range(3):
            p_ref = phase_refs[ki % 2][kj % 2]
            r0, c0 = ki // 2, kj // 2
            tap = p_ref[0, r0:r0 + oh, c0:c0 + ow, :]         # (OH, OW, Cin) bf16, VMEM load
            tap2d = tap.reshape(oh * ow, cin)                 # lane dim unchanged -> cheap
            k0 = (ki * 3 + kj) * cin
            acc = acc + jnp.dot(tap2d, w_ref[k0:k0 + cin, :], # MXU, f32 accum
                                preferred_element_type=jnp.float32)

    acc = acc + b_ref[...]                                    # bias, f32 (VPU)
    sig = pl.reciprocal(1.0 + jnp.exp(-acc), approx=True)     # EUP exp + rcp
    out = acc * sig                                           # SiLU, f32
    o_ref[...] = out.reshape(1, oh, ow, cl).astype(o_ref.dtype)   # unmasked 128-lane store


def _pallas_conv3x3_s2_silu(phases, w_pad, b_pad, oh, ow):
    n, ph_h, ph_w, cin = phases[0].shape
    k = w_pad.shape[0]
    phase_spec = pl.BlockSpec((1, ph_h, ph_w, cin), lambda i: (i, 0, 0, 0))

    # Advisory cost hint for the XLA scheduler around the custom call.
    flops = 2 * n * oh * ow * 9 * cin * LANES
    bytes_acc = (4 * n * ph_h * ph_w * cin * 2        # bf16 phase inputs
                 + k * LANES * 2 + LANES * 4          # weights + bias
                 + n * oh * ow * LANES * 4)           # f32 output
    cost = pl.CostEstimate(flops=flops,
                           transcendentals=n * oh * ow * LANES,
                           bytes_accessed=bytes_acc)

    return pl.pallas_call(
        _conv3x3_s2_silu_kernel,
        out_shape=jax.ShapeDtypeStruct((n, oh, ow, LANES), jnp.float32),
        grid_spec=pltpu.PrefetchScalarGridSpec(
            num_scalar_prefetch=0,
            grid=(n,),                                # >= 2 steps (batch axis)
            in_specs=[phase_spec, phase_spec, phase_spec, phase_spec,
                      pl.BlockSpec((k, LANES), lambda i: (0, 0)),
                      pl.BlockSpec((1, LANES), lambda i: (0, 0))],
            out_specs=pl.BlockSpec((1, oh, ow, LANES), lambda i: (i, 0, 0, 0)),
        ),
        compiler_params=pltpu.CompilerParams(
            dimension_semantics=("parallel",),        # shards batch over TCs on v7x
            vmem_limit_bytes=32 * 1024 * 1024),       # safe on v7x's 64 MiB VMEM
        cost_estimate=cost,
    )(*phases, w_pad, b_pad)


# ----------------------------------------------------------------------------
# Conv dispatcher: Pallas for the big early stages, plain XLA for tiny ones.
# ----------------------------------------------------------------------------
def conv2d_silu(x_nhwc, w_oihw, b):
    """3x3 stride-2 pad-1 conv + bias + SiLU.  NHWC activations, OIHW weight."""
    n, h, w, cin = x_nhwc.shape
    cout = w_oihw.shape[0]
    oh = (h + 2 - 3) // 2 + 1
    ow = (w + 2 - 3) // 2 + 1

    out_block_bytes = oh * ow * LANES * 4 * 2         # f32, double-buffered
    use_pallas = (h % 2 == 0 and w % 2 == 0 and cout <= LANES
                  and oh * ow >= _PALLAS_MIN_PIXELS
                  and out_block_bytes <= _PALLAS_MAX_OUT_VMEM)
    # TODO(synk): row-tile the output (overlapping phase windows via manual
    # DMA) instead of falling back once a whole image no longer fits VMEM.

    if use_pallas:
        xb = x_nhwc.astype(jnp.bfloat16)              # cast first: half the pad/slice bytes
        xp = jnp.pad(xb, ((0, 0), (1, 1), (1, 1), (0, 0)))
        # 4 stride-2 phase images (same total bytes as the input, no im2col).
        phases = [xp[:, a::2, b2::2, :] for a in range(2) for b2 in range(2)]
        w2d = jnp.transpose(w_oihw, (2, 3, 1, 0)).reshape(9 * cin, cout)
        w_pad = jnp.pad(w2d, ((0, 0), (0, LANES - cout))).astype(jnp.bfloat16)
        b_pad = jnp.pad(b.reshape(1, cout), ((0, 0), (0, LANES - cout)))
        b_pad = b_pad.astype(jnp.float32)
        y = _pallas_conv3x3_s2_silu(phases, w_pad, b_pad, oh, ow)
        return y[..., :cout]                          # drop lane padding

    # Tiny late stages: launch-free XLA path.
    y = jax.lax.conv_general_dilated(
        x_nhwc.astype(jnp.float32),
        jnp.transpose(w_oihw, (2, 3, 1, 0)),          # HWIO
        window_strides=(2, 2), padding=((1, 1), (1, 1)),
        dimension_numbers=('NHWC', 'HWIO', 'NHWC'))
    y = y + b.reshape(1, 1, 1, cout)
    return y * jax.nn.sigmoid(y)


# ----------------------------------------------------------------------------
# Surrogate backbone exposing extract_endpoints() with reduction_1..5 (NHWC).
# ----------------------------------------------------------------------------
class TinyEfficientNet:
    STAGE_CHANNELS = (8, 16, 24, 32, 48)   # 5 stride-2 stages -> /32 resolution

    def __init__(self, in_channels=3, key=jax.random.PRNGKey(42)):
        self.params = []
        cin = in_channels
        for cout in self.STAGE_CHANNELS:
            key, kw_, kb_ = jax.random.split(key, 3)
            fan_in = cin * 9
            w = jax.random.normal(kw_, (cout, cin, 3, 3), jnp.float32) * (2.0 / fan_in) ** 0.5
            b = jax.random.normal(kb_, (cout,), jnp.float32) * 0.01
            self.params.append((w, b))
            cin = cout

    def extract_endpoints(self, x_nchw):
        # Stay NHWC internally; only the endpoint actually consumed is
        # transposed back to NCHW (in EfficientNetFeatureMapGetter.__call__).
        x = jnp.transpose(x_nchw, (0, 2, 3, 1))
        endpoints = {}
        for idx, (w, b) in enumerate(self.params, start=1):
            x = conv2d_silu(x, w, b)
            endpoints[f'reduction_{idx}'] = x          # NHWC
        return endpoints


# ----------------------------------------------------------------------------
# The module under translation
# ----------------------------------------------------------------------------
class EfficientNetFeatureMapGetter:
    def __init__(self, model, feature_map_name='reduction_5', scale_factor=1):
        self.model = model
        self.feature_map_name = feature_map_name
        self.scale_factor = scale_factor

    def __call__(self, x):
        feature_maps = self.model.extract_endpoints(x)
        fm = feature_maps[self.feature_map_name]
        fm = jnp.transpose(fm, (0, 3, 1, 2))           # NHWC -> NCHW (only this one)
        if self.scale_factor > 1:
            s = int(self.scale_factor)
            # TODO(synk): non-integer scale_factor (nearest w/ floor) not reproduced.
            fm = jnp.repeat(jnp.repeat(fm, s, axis=2), s, axis=3)
        return {'out': fm}


if __name__ == "__main__":
    key = jax.random.PRNGKey(0)
    # NCHW input, small but deep enough for 5 stride-2 reductions (32 -> 1)
    x = jax.random.normal(key, (2, 3, 32, 32), dtype=jnp.float32)

    backbone = TinyEfficientNet(in_channels=3)

    # Cross-check the Pallas conv (stage 1 shape -> Pallas path) against XLA.
    w0, b0 = backbone.params[0]
    x_nhwc = jnp.transpose(x, (0, 2, 3, 1))
    y_pallas = conv2d_silu(x_nhwc, w0, b0)
    y_ref = jax.lax.conv_general_dilated(
        x_nhwc, jnp.transpose(w0, (2, 3, 1, 0)),
        window_strides=(2, 2), padding=((1, 1), (1, 1)),
        dimension_numbers=('NHWC', 'HWIO', 'NHWC')) + b0
    y_ref = y_ref * jax.nn.sigmoid(y_ref)
    err = float(jnp.max(jnp.abs(y_pallas - y_ref)))
    assert err < 0.25, f"pallas vs XLA conv mismatch: {err}"   # bf16 inputs, f32 accum

    getter = EfficientNetFeatureMapGetter(backbone,
                                          feature_map_name='reduction_5',
                                          scale_factor=2)
    out = jax.block_until_ready(getter(x)['out'])

    # reduction_5: (N, 48, 1, 1) -> scale_factor=2 -> (N, 48, 2, 2)
    assert out.shape == (2, 48, 2, 2), out.shape
    assert out.dtype == jnp.float32
    assert bool(jnp.all(jnp.isfinite(out)))
    print("KERNEL_OK")
</pallas_src>

<mosaic_0001>
module attributes {stable_mosaic.version = 11 : i64} {
  func.func @_conv3x3_s2_silu_kernel(%arg0: i32, %arg1: memref<1x17x17x3xbf16, #tpu.memory_space<vmem>>, %arg2: memref<1x17x17x3xbf16, #tpu.memory_space<vmem>>, %arg3: memref<1x17x17x3xbf16, #tpu.memory_space<vmem>>, %arg4: memref<1x17x17x3xbf16, #tpu.memory_space<vmem>>, %arg5: memref<27x128xbf16, #tpu.memory_space<vmem>>, %arg6: memref<1x128xf32, #tpu.memory_space<vmem>>, %arg7: memref<1x16x16x128xf32, #tpu.memory_space<vmem>>) attributes {dimension_semantics = [#tpu.dimension_semantics<parallel>], iteration_bounds = array<i64: 2>, scalar_prefetch = 0 : i64, scratch_operands = 0 : i64, tpu.core_type = #tpu.core_type<tc>, window_params = [{transform_indices = @transform_0, window_bounds = array<i64: 1, 17, 17, 3>}, {transform_indices = @transform_1, window_bounds = array<i64: 1, 17, 17, 3>}, {transform_indices = @transform_2, window_bounds = array<i64: 1, 17, 17, 3>}, {transform_indices = @transform_3, window_bounds = array<i64: 1, 17, 17, 3>}, {pipeline_mode = #tpu.pipeline_mode<synchronous>, transform_indices = @transform_4, window_bounds = array<i64: 27, 128>}, {pipeline_mode = #tpu.pipeline_mode<synchronous>, transform_indices = @transform_5, window_bounds = array<i64: 1, 128>}, {transform_indices = @transform_6, window_bounds = array<i64: 1, 16, 16, 128>}]} {
    %cst = arith.constant 0.000000e+00 : f32
    %0 = vector.broadcast %cst : f32 to vector<256x128xf32>
    %c0 = arith.constant 0 : index
    %c0_0 = arith.constant 0 : index
    %c0_1 = arith.constant 0 : index
    %c0_2 = arith.constant 0 : index
    %1 = vector.load %arg1[%c0, %c0_0, %c0_1, %c0_2] : memref<1x17x17x3xbf16, #tpu.memory_space<vmem>>, vector<1x16x16x3xbf16>
    %2 = vector.shape_cast %1 : vector<1x16x16x3xbf16> to vector<16x16x3xbf16>
    %3 = vector.shape_cast %2 : vector<16x16x3xbf16> to vector<256x3xbf16>
    %c0_3 = arith.constant 0 : index
    %c0_4 = arith.constant 0 : index
    %4 = vector.load %arg5[%c0_3, %c0_4] : memref<27x128xbf16, #tpu.memory_space<vmem>>, vector<3x128xbf16>
    %cst_5 = arith.constant dense<0.000000e+00> : vector<256x128xf32>
    %5 = tpu.matmul %3, %4, %cst_5 {dimension_numbers = #tpu.dot_dimension_numbers<[1], [0], [0], [1], [0, 0, 1, 1], [], []>} : vector<256x3xbf16>, vector<3x128xbf16>, vector<256x128xf32> -> vector<256x128xf32>
    %6 = arith.addf %0, %5 : vector<256x128xf32>
    %c0_6 = arith.constant 0 : index
    %c0_7 = arith.constant 0 : index
    %c0_8 = arith.constant 0 : index
    %c0_9 = arith.constant 0 : index
    %7 = vector.load %arg2[%c0_6, %c0_7, %c0_8, %c0_9] : memref<1x17x17x3xbf16, #tpu.memory_space<vmem>>, vector<1x16x16x3xbf16>
    %8 = vector.shape_cast %7 : vector<1x16x16x3xbf16> to vector<16x16x3xbf16>
    %9 = vector.shape_cast %8 : vector<16x16x3xbf16> to vector<256x3xbf16>
    %c3 = arith.constant 3 : index
    %c0_10 = arith.constant 0 : index
    %10 = vector.load %arg5[%c3, %c0_10] : memref<27x128xbf16, #tpu.memory_space<vmem>>, vector<3x128xbf16>
    %cst_11 = arith.constant dense<0.000000e+00> : vector<256x128xf32>
    %11 = tpu.matmul %9, %10, %cst_11 {dimension_numbers = #tpu.dot_dimension_numbers<[1], [0], [0], [1], [0, 0, 1, 1], [], []>} : vector<256x3xbf16>, vector<3x128xbf16>, vector<256x128xf32> -> vector<256x128xf32>
    %12 = arith.addf %6, %11 : vector<256x128xf32>
    %c0_12 = arith.constant 0 : index
    %c0_13 = arith.constant 0 : index
    %c1 = arith.constant 1 : index
    %c0_14 = arith.constant 0 : index
    %13 = vector.load %arg1[%c0_12, %c0_13, %c1, %c0_14] : memref<1x17x17x3xbf16, #tpu.memory_space<vmem>>, vector<1x16x16x3xbf16>
    %14 = vector.shape_cast %13 : vector<1x16x16x3xbf16> to vector<16x16x3xbf16>
    %15 = vector.shape_cast %14 : vector<16x16x3xbf16> to vector<256x3xbf16>
    %c6 = arith.constant 6 : index
    %c0_15 = arith.constant 0 : index
    %16 = vector.load %arg5[%c6, %c0_15] : memref<27x128xbf16, #tpu.memory_space<vmem>>, vector<3x128xbf16>
    %cst_16 = arith.constant dense<0.000000e+00> : vector<256x128xf32>
    %17 = tpu.matmul %15, %16, %cst_16 {dimension_numbers = #tpu.dot_dimension_numbers<[1], [0], [0], [1], [0, 0, 1, 1], [], []>} : vector<256x3xbf16>, vector<3x128xbf16>, vector<256x128xf32> -> vector<256x128xf32>
    %18 = arith.addf %12, %17 : vector<256x128xf32>
    %c0_17 = arith.constant 0 : index
    %c0_18 = arith.constant 0 : index
    %c0_19 = arith.constant 0 : index
    %c0_20 = arith.constant 0 : index
    %19 = vector.load %arg3[%c0_17, %c0_18, %c0_19, %c0_20] : memref<1x17x17x3xbf16, #tpu.memory_space<vmem>>, vector<1x16x16x3xbf16>
    %20 = vector.shape_cast %19 : vector<1x16x16x3xbf16> to vector<16x16x3xbf16>
    %21 = vector.shape_cast %20 : vector<16x16x3xbf16> to vector<256x3xbf16>
    %c9 = arith.constant 9 : index
    %c0_21 = arith.constant 0 : index
    %22 = vector.load %arg5[%c9, %c0_21] : memref<27x128xbf16, #tpu.memory_space<vmem>>, vector<3x128xbf16>
    %cst_22 = arith.constant dense<0.000000e+00> : vector<256x128xf32>
    %23 = tpu.matmul %21, %22, %cst_22 {dimension_numbers = #tpu.dot_dimension_numbers<[1], [0], [0], [1], [0, 0, 1, 1], [], []>} : vector<256x3xbf16>, vector<3x128xbf16>, vector<256x128xf32> -> vector<256x128xf32>
    %24 = arith.addf %18, %23 : vector<256x128xf32>
    %c0_23 = arith.constant 0 : index
    %c0_24 = arith.constant 0 : index
    %c0_25 = arith.constant 0 : index
    %c0_26 = arith.constant 0 : index
    %25 = vector.load %arg4[%c0_23, %c0_24, %c0_25, %c0_26] : memref<1x17x17x3xbf16, #tpu.memory_space<vmem>>, vector<1x16x16x3xbf16>
    %26 = vector.shape_cast %25 : vector<1x16x16x3xbf16> to vector<16x16x3xbf16>
    %27 = vector.shape_cast %26 : vector<16x16x3xbf16> to vector<256x3xbf16>
    %c12 = arith.constant 12 : index
    %c0_27 = arith.constant 0 : index
    %28 = vector.load %arg5[%c12, %c0_27] : memref<27x128xbf16, #tpu.memory_space<vmem>>, vector<3x128xbf16>
    %cst_28 = arith.constant dense<0.000000e+00> : vector<256x128xf32>
    %29 = tpu.matmul %27, %28, %cst_28 {dimension_numbers = #tpu.dot_dimension_numbers<[1], [0], [0], [1], [0, 0, 1, 1], [], []>} : vector<256x3xbf16>, vector<3x128xbf16>, vector<256x128xf32> -> vector<256x128xf32>
    %30 = arith.addf %24, %29 : vector<256x128xf32>
    %c0_29 = arith.constant 0 : index
    %c0_30 = arith.constant 0 : index
    %c1_31 = arith.constant 1 : index
    %c0_32 = arith.constant 0 : index
    %31 = vector.load %arg3[%c0_29, %c0_30, %c1_31, %c0_32] : memref<1x17x17x3xbf16, #tpu.memory_space<vmem>>, vector<1x16x16x3xbf16>
    %32 = vector.shape_cast %31 : vector<1x16x16x3xbf16> to vector<16x16x3xbf16>
    %33 = vector.shape_cast %32 : vector<16x16x3xbf16> to vector<256x3xbf16>
    %c15 = arith.constant 15 : index
    %c0_33 = arith.constant 0 : index
    %34 = vector.load %arg5[%c15, %c0_33] : memref<27x128xbf16, #tpu.memory_space<vmem>>, vector<3x128xbf16>
    %cst_34 = arith.constant dense<0.000000e+00> : vector<256x128xf32>
    %35 = tpu.matmul %33, %34, %cst_34 {dimension_numbers = #tpu.dot_dimension_numbers<[1], [0], [0], [1], [0, 0, 1, 1], [], []>} : vector<256x3xbf16>, vector<3x128xbf16>, vector<256x128xf32> -> vector<256x128xf32>
    %36 = arith.addf %30, %35 : vector<256x128xf32>
    %c0_35 = arith.constant 0 : index
    %c1_36 = arith.constant 1 : index
    %c0_37 = arith.constant 0 : index
    %c0_38 = arith.constant 0 : index
    %37 = vector.load %arg1[%c0_35, %c1_36, %c0_37, %c0_38] : memref<1x17x17x3xbf16, #tpu.memory_space<vmem>>, vector<1x16x16x3xbf16>
    %38 = vector.shape_cast %37 : vector<1x16x16x3xbf16> to vector<16x16x3xbf16>
    %39 = vector.shape_cast %38 : vector<16x16x3xbf16> to vector<256x3xbf16>
    %c18 = arith.constant 18 : index
    %c0_39 = arith.constant 0 : index
    %40 = vector.load %arg5[%c18, %c0_39] : memref<27x128xbf16, #tpu.memory_space<vmem>>, vector<3x128xbf16>
    %cst_40 = arith.constant dense<0.000000e+00> : vector<256x128xf32>
    %41 = tpu.matmul %39, %40, %cst_40 {dimension_numbers = #tpu.dot_dimension_numbers<[1], [0], [0], [1], [0, 0, 1, 1], [], []>} : vector<256x3xbf16>, vector<3x128xbf16>, vector<256x128xf32> -> vector<256x128xf32>
    %42 = arith.addf %36, %41 : vector<256x128xf32>
    %c0_41 = arith.constant 0 : index
    %c1_42 = arith.constant 1 : index
    %c0_43 = arith.constant 0 : index
    %c0_44 = arith.constant 0 : index
    %43 = vector.load %arg2[%c0_41, %c1_42, %c0_43, %c0_44] : memref<1x17x17x3xbf16, #tpu.memory_space<vmem>>, vector<1x16x16x3xbf16>
    %44 = vector.shape_cast %43 : vector<1x16x16x3xbf16> to vector<16x16x3xbf16>
    %45 = vector.shape_cast %44 : vector<16x16x3xbf16> to vector<256x3xbf16>
    %c21 = arith.constant 21 : index
    %c0_45 = arith.constant 0 : index
    %46 = vector.load %arg5[%c21, %c0_45] : memref<27x128xbf16, #tpu.memory_space<vmem>>, vector<3x128xbf16>
    %cst_46 = arith.constant dense<0.000000e+00> : vector<256x128xf32>
    %47 = tpu.matmul %45, %46, %cst_46 {dimension_numbers = #tpu.dot_dimension_numbers<[1], [0], [0], [1], [0, 0, 1, 1], [], []>} : vector<256x3xbf16>, vector<3x128xbf16>, vector<256x128xf32> -> vector<256x128xf32>
    %48 = arith.addf %42, %47 : vector<256x128xf32>
    %c0_47 = arith.constant 0 : index
    %c1_48 = arith.constant 1 : index
    %c1_49 = arith.constant 1 : index
    %c0_50 = arith.constant 0 : index
    %49 = vector.load %arg1[%c0_47, %c1_48, %c1_49, %c0_50] : memref<1x17x17x3xbf16, #tpu.memory_space<vmem>>, vector<1x16x16x3xbf16>
    %50 = vector.shape_cast %49 : vector<1x16x16x3xbf16> to vector<16x16x3xbf16>
    %51 = vector.shape_cast %50 : vector<16x16x3xbf16> to vector<256x3xbf16>
    %c24 = arith.constant 24 : index
    %c0_51 = arith.constant 0 : index
    %52 = vector.load %arg5[%c24, %c0_51] : memref<27x128xbf16, #tpu.memory_space<vmem>>, vector<3x128xbf16>
    %cst_52 = arith.constant dense<0.000000e+00> : vector<256x128xf32>
    %53 = tpu.matmul %51, %52, %cst_52 {dimension_numbers = #tpu.dot_dimension_numbers<[1], [0], [0], [1], [0, 0, 1, 1], [], []>} : vector<256x3xbf16>, vector<3x128xbf16>, vector<256x128xf32> -> vector<256x128xf32>
    %54 = arith.addf %48, %53 : vector<256x128xf32>
    %c0_53 = arith.constant 0 : index
    %c0_54 = arith.constant 0 : index
    %55 = vector.load %arg6[%c0_53, %c0_54] : memref<1x128xf32, #tpu.memory_space<vmem>>, vector<1x128xf32>
    %56 = vector.broadcast %55 : vector<1x128xf32> to vector<256x128xf32>
    %57 = arith.addf %54, %56 : vector<256x128xf32>
    %cst_55 = arith.constant 0.000000e+00 : f32
    %58 = vector.broadcast %cst_55 : f32 to vector<256x128xf32>
    %59 = arith.subf %58, %57 : vector<256x128xf32>
    %60 = math.exp %59 : vector<256x128xf32>
    %cst_56 = arith.constant 1.000000e+00 : f32
    %61 = vector.broadcast %cst_56 : f32 to vector<256x128xf32>
    %62 = arith.addf %61, %60 : vector<256x128xf32>
    %63 = tpu.reciprocal %62 {approx = true} : vector<256x128xf32> -> vector<256x128xf32>
    %64 = arith.mulf %57, %63 : vector<256x128xf32>
    %65 = vector.shape_cast %64 : vector<256x128xf32> to vector<1x16x16x128xf32>
    %c0_57 = arith.constant 0 : index
    %c0_58 = arith.constant 0 : index
    %c0_59 = arith.constant 0 : index
    %c0_60 = arith.constant 0 : index
    %66 = vector.load %arg7[%c0_57, %c0_58, %c0_59, %c0_60] : memref<1x16x16x128xf32, #tpu.memory_space<vmem>>, vector<1x16x16x128xf32>
    tpu.vector_store %arg7[%c0_57, %c0_58, %c0_59, %c0_60], %65 {strides = array<i32>} : memref<1x16x16x128xf32, #tpu.memory_space<vmem>>, vector<1x16x16x128xf32>,
    return
  }
  func.func @transform_0(%arg0: i32) -> (i32, i32, i32, i32) {
    %c0_i32 = arith.constant 0 : i32
    %c0_i32_0 = arith.constant 0 : i32
    %c0_i32_1 = arith.constant 0 : i32
    %c0_i32_2 = arith.constant 0 : i32
    return %arg0, %c0_i32, %c0_i32_0, %c0_i32_1 : i32, i32, i32, i32
  }
  func.func @transform_1(%arg0: i32) -> (i32, i32, i32, i32) {
    %c0_i32 = arith.constant 0 : i32
    %c0_i32_0 = arith.constant 0 : i32
    %c0_i32_1 = arith.constant 0 : i32
    %c0_i32_2 = arith.constant 0 : i32
    return %arg0, %c0_i32, %c0_i32_0, %c0_i32_1 : i32, i32, i32, i32
  }
  func.func @transform_2(%arg0: i32) -> (i32, i32, i32, i32) {
    %c0_i32 = arith.constant 0 : i32
    %c0_i32_0 = arith.constant 0 : i32
    %c0_i32_1 = arith.constant 0 : i32
    %c0_i32_2 = arith.constant 0 : i32
    return %arg0, %c0_i32, %c0_i32_0, %c0_i32_1 : i32, i32, i32, i32
  }
  func.func @transform_3(%arg0: i32) -> (i32, i32, i32, i32) {
    %c0_i32 = arith.constant 0 : i32
    %c0_i32_0 = arith.constant 0 : i32
    %c0_i32_1 = arith.constant 0 : i32
    %c0_i32_2 = arith.constant 0 : i32
    return %arg0, %c0_i32, %c0_i32_0, %c0_i32_1 : i32, i32, i32, i32
  }
  func.func @transform_4(%arg0: i32) -> (i32, i32) {
    %c0_i32 = arith.constant 0 : i32
    %c0_i32_0 = arith.constant 0 : i32
    %c0_i32_1 = arith.constant 0 : i32
    return %c0_i32, %c0_i32_0 : i32, i32
  }
  func.func @transform_5(%arg0: i32) -> (i32, i32) {
    %c0_i32 = arith.constant 0 : i32
    %c0_i32_0 = arith.constant 0 : i32
    %c0_i32_1 = arith.constant 0 : i32
    return %c0_i32, %c0_i32_0 : i32, i32
  }
  func.func @transform_6(%arg0: i32) -> (i32, i32, i32, i32) {
    %c0_i32 = arith.constant 0 : i32
    %c0_i32_0 = arith.constant 0 : i32
    %c0_i32_1 = arith.constant 0 : i32
    %c0_i32_2 = arith.constant 0 : i32
    return %arg0, %c0_i32, %c0_i32_0, %c0_i32_1 : i32, i32, i32, i32
  }
}

</mosaic_0001>

<bundles_post_ra>
// kernel: tpu_custom_call.1
= control target key start
LH: loop header
LB: loop body
LE: loop exit
PB: predicated region body
PF: predicated region fallthrough
CT: control target
= control target key end

     0   :  { %11 = vsyncpa [#allocation3], 0  ;;  %s7657_s0 = inlined_call_operand.vmem [shape: bf16[2,17,17,3], index: 0, kind: input, shape index: {}]   ;;  %s7658_s1 = inlined_call_operand.vmem [shape: bf16[2,17,17,3], index: 1, kind: input, shape index: {}]   ;;  %s7659_s2 = inlined_call_operand.vmem [shape: bf16[2,17,17,3], index: 2, kind: input, shape index: {}]   ;;  %s7660_s3 = inlined_call_operand.vmem [shape: bf16[2,17,17,3], index: 3, kind: input, shape index: {}]   ;;  %s7661_s4 = inlined_call_operand.vmem [shape: bf16[27,128], index: 4, kind: input, shape index: {}]   ;;  %s7662_s5 = inlined_call_operand.vmem [shape: f32[1,128], index: 5, kind: input, shape index: {}]   ;;  %s7663_s6 = inlined_call_operand.hbm [shape: f32[2,16,16,128], index: 6, kind: output, shape index: {}]  }
   0x1   :  { %13 = vsyncpa [#allocation3 + $0x1], 0  ;;  %s6527_s21 = smov 0   ;;  %s6529_s22 = smov 0  }
   0x2   :  { %s6531_s23 = smov 0   ;;  %s6533_s24 = smov 0  }
   0x3 LB: > { %s6548_s25 = sadd.s32 4294967295, %s6486_s24   ;;  %s5010_s26 = sadd.s32 4294967294, %s6486_s24   ;;  %s6486_s24 = sphi %s6533_s24, %s7671_s24   ;;  %s6482_s23 = sphi %s6531_s23, %s7670_s23   ;;  %s6478_s22 = sphi %s6529_s22, %s7669_s22   ;;  %s6474_s21 = sphi %s6527_s21, %s7668_s21  }
   0x4   : > { %s6552_s27 = sadd.s32 1, %s6486_s24   ;;  %s172_s28 = sadd.s32 1, %s6482_s23 }
   0x5   : > { %s169_s29 = ssub.s32 %s6486_s24, %s6552_s27  ;;  %p182_p0 = scmp.ne.s32.totalorder %s6482_s23, %s6478_s22 }
   0x6   : > { %p170_p1 = scmp.eq.s32.totalorder %s169_s29, 0  ;;  %p183_p2 = scmp.eq.s32.totalorder %s6548_s25, 1 }
   0x7   : > { %p188_p3 = scmp.ne.s32.totalorder %s6478_s22, %s6474_s21  ;;  %p189_p4 = scmp.eq.s32.totalorder %s5010_s26, 1 }
   0x8   : > { %s6563_s30 = scalar_select %p170_p1, %s6482_s23, %s172_s28  }
   0x9   : > { %p6565_p5 = por %p183_p2, %p182_p0  ;;  %p6569_p6 = por %p189_p4, %p188_p3 }
   0xa   : > { %p5013_p7 = scmp.ge.s32.totalorder %s6486_s24, 1  ;;  %p245_p8 = scmp.lt.s32.totalorder %s6486_s24, 3 }
   0xc   : > { %p246_p9 = pnand %p5013_p7, %p245_p8 }
   0xd   : > { %vm517_vm0 = vcmask (!%p246_p9), 1040384   ;;  %vm518_vm1 = vcmask (!%p246_p9), 1041408   ;;  %p290_p10 = scmp.lt.s32.totalorder (!%p246_p9), %s6548_s25, 1  ;;  %v6488_v0 = vmov (!%p246_p9), 65535   ;;  %v6199_v6 = vld [vmem:[%s7661_s4 + $0x4] sm:$0x18] (!%p246_p9)  }
   0xe   : > { %249 = sbr.rel (%p246_p9) target bundleno = 582 (0x246), region = 44  ;;  %v519_v1 = vsel (!%p246_p9), %vm517_vm0, 4294967295, %v6488_v0  ;;  %v6193_v2 = vld [vmem:[%s7661_s4 + $0x4] ss:$0 sps:$4 sm:$0xcc] (!%p246_p9)   ;;  %vm468_vm2 = vcmask (!%p246_p9), 23552  }
   0xf   : > { %v6579_v3 = vsel (!%p246_p9), %vm518_vm1, %v519_v1, 0  ;;  %v2195_v4 = vrot.slane (!%p246_p9), %v6193_v2, 2  ;;  %v6195_v5 = vld [vmem:[%s7661_s4] ss:$0 sps:$4 sm:$0x66] (!%p246_p9)   ;;  %v2928_v11 = vshrl.u32 (!%p246_p9), %v6199_v6, 16 }
  0x10   : > { %v461_v8 = vshrl.u32 (!%p246_p9), %v6195_v5, 16  ;;  %v464_v9 = vshll.u32 (!%p246_p9), %v6195_v5, 16  ;;  %v343_v10 = vld [vmem:[%s7661_s4] sm:$0x3] (!%p246_p9)  ;;  %v2931_v12 = vshll.u32 (!%p246_p9), %v6199_v6, 16  ;;  %s5432_s17 = sshll.u32 (!%p246_p9), %s6548_s25, 12 }
  0x11   : > { %v6591_v7 = vand.u32 (!%p246_p9), %v2195_v4, %v6579_v3  ;;  %v2930_v16 = vrot.slane (!%p246_p9), %v2928_v11, 3  ;;  %v814_v22 = vand.u32 (!%p246_p9), %v6579_v3, %v343_v10  ;;  %vm1025_vm3 = vsmask.f32 (!%p246_p9), 3328  ;;  %s7607_s26 = scalar_lea.hbm (!%p246_p9), %s7663_s6, %s5432_s17  ;;  %s6489_s29 = smov (!%p246_p9), [#allocation2]  }
  0x12   : > { %v463_v13 = vrot.slane (!%p246_p9), %v461_v8, 1  ;;  %v466_v14 = vrot.slane (!%p246_p9), %v464_v9, 2  ;;  %v2933_v19 = vrot.slane (!%p246_p9), %v2931_v12, 4  ;;  %vm1026_vm4 = vsmask.f32 (!%p246_p9), 7440  ;;  %s6428_s10 = sshll.u32 (!%p246_p9), %s6489_s29, 4  ;;  %s6429_s10 = int_to_ptr.vmem [resolvable:$false] %s6428_s10 }
  0x13   : > { %5722 = vmatprep.subr.bf16.mxu0 (!%p246_p9), %v6591_v7  ;;  %vm6654_vm5 = vmor (!%p246_p9), %vm1025_vm3, %vm1026_vm4  ;;  %v6214_v8 = vld [vmem:[%s7661_s4 + $0x8] ss:$0 sps:$4 sm:$0x66] (!%p246_p9)  }
  0x14   : > { %5723 = vmatpush3.bf16.msra.mxu0 (!%p246_p9), %v6591_v7  ;;  %v467_v17 = vor.u32 (!%p246_p9), %v466_v14, %v463_v13  ;;  %v2934_v23 = vor.u32 (!%p246_p9), %v2933_v19, %v2930_v16  ;;  %v3296_v19 = vrot.slane (!%p246_p9), %v6214_v8, 1 }
  0x15   : > { %s291_s11 = scalar_select %p290_p10, %s6548_s25, 1 }
  0x16   : > { %v522_v21 = vand.u32 %v6579_v3, %v467_v17  ;;  %v2984_v26 = vand.u32 %v2934_v23, %v6579_v3 }
  0x17   : > { %s6585_s14 = smul.u32 204, %s291_s11  ;;  %s6430_s11 = scalar_lea.vmem %s6429_s10, 8192 }
  0x18   : > { %5586 = vmatprep.subr.bf16.mxu1 %v522_v21  ;;  %5756 = vmatprep.subr.bf16.mxu0 %v2984_v26 }
  0x19   : > { %s6597_s19 = scalar_lea.vmem %s7658_s1, %s6585_s14  ;;  %s6607_s9 = scalar_lea.vmem %s7660_s3, %s6585_s14  ;;  %5587 = vmatpush3.bf16.msra.mxu1 %v522_v21 }
  0x1a   : > { %v6194_v15 = vld [vmem:[%s6607_s9] sm:$0xff]   ;;  %v6196_v18 = vld [vmem:[%s6607_s9 + $0xc] sm:$0xff]   ;;  %v6200_v24 = vld [vmem:[%s6607_s9 + $0x18] sm:$0xff]   ;;  %5620 = vmatprep.subr.bf16.mxu1 %v814_v22  ;;  %s6632_s12 = scalar_lea.vmem %s7659_s2, %s6585_s14  ;;  %s6729_s18 = scalar_lea.vmem %s7657_s0, %s6585_s14 }
  0x1b   : > { %5724 = vmatprep.mubr.msk.bf16.mxu0 %vm468_vm2, %v6194_v15  ;;  %v6197_v20 = vld [vmem:[%s6597_s19] sm:$0xff]   ;;  %v6198_v25 = vld [vmem:[%s6597_s19 + $0xc] sm:$0xff]   ;;  %v6202_v27 = vld [vmem:[%s6597_s19 + $0x18] sm:$0xff]  }
  0x1c   : > { %5725 = vmatmul.mubr.msk.bf16.vlgmr.msra.gmra.mrb[0].mxu0 %vm468_vm2, %v6196_v18  ;;  %5588 = vmatprep.mubr.msk.bf16.mxu1 %vm468_vm2, %v6197_v20  ;;  %v6201_v28 = vld [vmem:[%s6607_s9 + $0x24] sm:$0xff]   ;;  %v6204_v29 = vld [vmem:[%s6607_s9 + $0x30] sm:$0xff]   ;;  %v6205_v31 = vld [vmem:[%s6607_s9 + $0x3c] sm:$0xff]  }
  0x1d   : > { %5728 = vmatprep.mubr.msk.bf16.mxu0 %vm468_vm2, %v6200_v24  ;;  %5757 = vmatpush3.bf16.msra.mxu0 %v2984_v26  ;;  %v6203_v30 = vld [vmem:[%s6597_s19 + $0x24] sm:$0xff]   ;;  %v6206_v32 = vld [vmem:[%s6597_s19 + $0x30] sm:$0xff]   ;;  %v2440_v34 = vld [vmem:[%s6632_s12] sm:$0xf] }
  0x1e   : > { %5589 = vmatmul.mubr.msk.bf16.vlgmr.msra.gmra.mrb[0].mxu1 %vm468_vm2, %v6198_v25  ;;  %v6208_v33 = vld [vmem:[%s6607_s9 + $0x48] sm:$0xff]   ;;  %v2441_v35 = vld [vmem:[%s6632_s12 + $0x4] sm:$0xf]  ;;  %v2489_v37 = vshrl.u32 %v2440_v34, 16  ;;  %v2492_v38 = vshll.u32 %v2440_v34, 16  ;;  %v6207_v49 = vld [vmem:[%s6597_s19 + $0x3c] sm:$0xff]  }
  0x1f   : > { %5621 = vmatpush3.bf16.msra.mxu1 %v814_v22  ;;  %5592 = vmatprep.mubr.msk.bf16.mxu1 %vm468_vm2, %v6202_v27  ;;  %v2442_v36 = vld [vmem:[%s6632_s12 + $0x8] sm:$0x1]  ;;  %v2498_v39 = vshll.u32 %v2441_v35, 16  ;;  %v2502_v40 = vshrl.u32 %v2441_v35, 16  ;;  %v2443_v42 = vld [vmem:[%s6632_s12 + $0xc] sm:$0xf] }
  0x20   : > { %v2508_v41 = vshll.u32 %v2442_v36, 16  ;;  %v2444_v43 = vld [vmem:[%s6632_s12 + $0x10] sm:$0xf]  ;;  %v2491_v44 = vrot.slane %v2489_v37, 4  ;;  %v2494_v45 = vrot.slane %v2492_v38, 5  ;;  %v2513_v51 = vshrl.u32 %v2443_v42, 16 }
  0x21   : > { %v2500_v46 = vrot.slane %v2498_v39, 5  ;;  %v2504_v47 = vrot.slane %v2502_v40, 4  ;;  %v2445_v48 = vld [vmem:[%s6632_s12 + $0x14] sm:$0x1]  ;;  %v2516_v52 = vshll.u32 %v2443_v42, 16  ;;  %v2522_v53 = vshll.u32 %v2444_v43, 16 }
  0x22   : > { %v2510_v50 = vrot.slane %v2508_v41, 5  ;;  %v2495_v54 = vor.u32 %v2494_v45, %v2491_v44  ;;  %v2526_v56 = vshrl.u32 %v2444_v43, 16  ;;  %v2532_v57 = vshll.u32 %v2445_v48, 16  ;;  %v6209_v58 = vld [vmem:[%s6607_s9 + $0x54] sm:$0xff]   ;;  %v6210_v59 = vld [vmem:[%s6597_s19 + $0x48] sm:$0xff]   ;;  %v6212_v41 = vld [vmem:[%s6597_s19 + $0x60] sm:$0xff]  }
  0x23   : > { %v2505_v55 = vor.u32 %v2504_v47, %v2500_v46  ;;  %v2515_v61 = vrot.slane %v2513_v51, 4  ;;  %v2518_v62 = vrot.slane %v2516_v52, 5  ;;  %v2524_v63 = vrot.slane %v2522_v53, 5  ;;  %v2446_v5 = vld [vmem:[%s6632_s12 + $0x18] sm:$0xf] }
  0x24   : > { %5729 = vmatmul.mubr.msk.bf16.gmra.mrb[4].mxu0 %vm468_vm2, %v6201_v28  ;;  %v2496_v0 = vrot.slane %v2495_v54, 4  ;;  %v2528_v2 = vrot.slane %v2526_v56, 4  ;;  %v2534_v4 = vrot.slane %v2532_v57, 5  ;;  %v2447_v9 = vld [vmem:[%s6632_s12 + $0x1c] sm:$0xf]  ;;  %v2537_v10 = vshrl.u32 %v2446_v5, 16 }
  0x25   : > { %5732 = vmatprep.mubr.msk.bf16.mxu0 %vm468_vm2, %v6204_v29  ;;  %v2506_v1 = vrot.slane %v2505_v55, 4  ;;  %v2519_v6 = vor.u32 %v2518_v62, %v2515_v61  ;;  %v2448_v14 = vld [vmem:[%s6632_s12 + $0x20] sm:$0x1]  ;;  %v2540_v15 = vshll.u32 %v2446_v5, 16  ;;  %v2449_v16 = vld [vmem:[%s6632_s12 + $0x24] sm:$0xf]  ;;  %v3346_v28 = vand.u32 %v3296_v19, %v6579_v3 }
  0x26   : > { %5593 = vmatmul.mubr.msk.bf16.gmra.mrb[4].mxu1 %vm468_vm2, %v6203_v30  ;;  %v2501_v11 = vsel %vm6654_vm5, %v2496_v0, %v2500_v46  ;;  %v2529_v13 = vor.u32 %v2528_v2, %v2524_v63  ;;  %v2539_v20 = vrot.slane %v2537_v10, 4  ;;  %v2450_v21 = vld [vmem:[%s6632_s12 + $0x28] sm:$0xf]  ;;  %v2546_v24 = vshll.u32 %v2447_v9, 16  ;;  %v2451_v26 = vld [vmem:[%s6632_s12 + $0x2c] sm:$0x1] }
  0x27   : > { %5596 = vmatprep.mubr.msk.bf16.mxu1 %vm468_vm2, %v6206_v32  ;;  %v2511_v12 = vsel %vm6654_vm5, %v2506_v1, %v2510_v50  ;;  %v2520_v18 = vrot.slane %v2519_v6, 4  ;;  %v2542_v23 = vrot.slane %v2540_v15, 5  ;;  %v2550_v25 = vshrl.u32 %v2447_v9, 16  ;;  %v6211_v35 = vld [vmem:[%s6597_s19 + $0x54] sm:$0xff]   ;;  %5790 = vmatprep.subr.bf16.mxu0 %v3346_v28  ;;  %v2452_v40 = vld [vmem:[%s6632_s12 + $0x30] sm:$0xf] }
  0x28   : > { %v5183_v17 = vcombine.low %v2501_v11, %v2511_v12  ;;  %v2530_v22 = vrot.slane %v2529_v13, 4  ;;  %v2556_v29 = vshll.u32 %v2448_v14, 16  ;;  %v2561_v30 = vshrl.u32 %v2449_v16, 16  ;;  %v2453_v48 = vld [vmem:[%s6632_s12 + $0x34] sm:$0xf]  ;;  %v6213_v14 = vld [vmem:[%s6597_s19 + $0x6c] sm:$0xff]  }
  0x29   : > { %v2525_v27 = vsel %vm6654_vm5, %v2520_v18, %v2524_v63  ;;  %v2543_v32 = vor.u32 %v2542_v23, %v2539_v20  ;;  %v2552_v34 = vrot.slane %v2550_v25, 4  ;;  %v2564_v39 = vshll.u32 %v2449_v16, 16  ;;  %v2454_v55 = vld [vmem:[%s6632_s12 + $0x38] sm:$0x1]  ;;  %v2455_v61 = vld [vmem:[%s6632_s12 + $0x3c] sm:$0xf] }
  0x2a   : > { %v2558_v37 = vrot.slane %v2556_v29, 5  ;;  %v2563_v38 = vrot.slane %v2561_v30, 4  ;;  %v2570_v44 = vshll.u32 %v2450_v21, 16  ;;  %v2574_v45 = vshrl.u32 %v2450_v21, 16  ;;  %v2456_v2 = vld [vmem:[%s6632_s12 + $0x40] sm:$0xf] }
  0x2b   : > { %v2544_v42 = vrot.slane %v2543_v32, 4  ;;  %v2566_v46 = vrot.slane %v2564_v39, 5  ;;  %v2580_v47 = vshll.u32 %v2451_v26, 16  ;;  %v2588_v50 = vshll.u32 %v2452_v40, 16  ;;  %v2457_v9 = vld [vmem:[%s6632_s12 + $0x44] sm:$0x1] }
  0x2c   : > { %5733 = vmatmul.mubr.msk.bf16.gmra.mrb[8].mxu0 %vm468_vm2, %v6205_v31  ;;  %v2535_v31 = vsel %vm6654_vm5, %v2530_v22, %v2534_v4  ;;  %v2572_v53 = vrot.slane %v2570_v44, 5  ;;  %v2576_v54 = vrot.slane %v2574_v45, 4  ;;  %v2594_v0 = vshll.u32 %v2453_v48, 16  ;;  %v2458_v19 = vld [vmem:[%s6632_s12 + $0x48] sm:$0xf]  ;;  %v6215_v21 = vld [vmem:[%s6597_s19 + $0x78] sm:$0xff]  }
  0x2d   : > { %5736 = vmatprep.mubr.msk.bf16.mxu0 %vm468_vm2, %v6208_v33  ;;  %v2548_v33 = vrot.slane %v2546_v24, 5  ;;  %v5184_v36 = vcombine.low %v2525_v27, %v2535_v31  ;;  %v2567_v56 = vor.u32 %v2566_v46, %v2563_v38  ;;  %v2582_v57 = vrot.slane %v2580_v47, 5  ;;  %v2459_v25 = vld [vmem:[%s6632_s12 + $0x4c] sm:$0xf]  ;;  %v2460_v30 = vld [vmem:[%s6632_s12 + $0x50] sm:$0x1] }
  0x2e   : > { %5597 = vmatmul.mubr.msk.bf16.gmra.mrb[8].mxu1 %vm468_vm2, %v6207_v49  ;;  %v2585_v49 = vshrl.u32 %v2452_v40, 16  ;;  %v2577_v63 = vor.u32 %v2576_v54, %v2572_v53  ;;  %v2598_v1 = vshrl.u32 %v2453_v48, 16  ;;  %v2604_v8 = vshll.u32 %v2454_v55, 16  ;;  %v2462_v40 = vld [vmem:[%s6632_s12 + $0x58] sm:$0xf] }
  0x2f   : > { %5600 = vmatprep.mubr.msk.bf16.mxu1 %vm468_vm2, %v6210_v59  ;;  %v2553_v43 = vor.u32 %v2552_v34, %v2548_v33  ;;  %v2549_v51 = vsel %vm6654_vm5, %v2544_v42, %v2548_v33  ;;  %v2590_v59 = vrot.slane %v2588_v50, 5  ;;  %v2568_v5 = vrot.slane %v2567_v56, 4 }
  0x30   : > { %v2578_v10 = vrot.slane %v2577_v63, 4  ;;  %v2596_v11 = vrot.slane %v2594_v0, 5  ;;  %v2600_v12 = vrot.slane %v2598_v1, 4  ;;  %v2609_v13 = vshrl.u32 %v2455_v61, 16 }
  0x31   : > { %v2554_v52 = vrot.slane %v2553_v43, 4  ;;  %v2573_v15 = vsel %vm6654_vm5, %v2568_v5, %v2572_v53  ;;  %v2612_v18 = vshll.u32 %v2455_v61, 16  ;;  %v2618_v24 = vshll.u32 %v2456_v2, 16  ;;  %v6217_v61 = vld [vmem:[%s6597_s19 + $0x90] sm:$0xff]  }
  0x32   : > { %v2583_v20 = vsel %vm6654_vm5, %v2578_v10, %v2582_v57  ;;  %v2601_v22 = vor.u32 %v2600_v12, %v2596_v11  ;;  %v2611_v23 = vrot.slane %v2609_v13, 4  ;;  %v2622_v29 = vshrl.u32 %v2456_v2, 16  ;;  %v2463_v57 = vld [vmem:[%s6632_s12 + $0x5c] sm:$0x1]  ;;  %v2465_v2 = vld [vmem:[%s6632_s12 + $0x64] sm:$0xf] }
  0x33   : > { %v2559_v62 = vsel %vm6654_vm5, %v2554_v52, %v2558_v37  ;;  %v5186_v26 = vcombine.low %v2573_v15, %v2583_v20  ;;  %v2620_v32 = vrot.slane %v2618_v24, 5  ;;  %v2628_v33 = vshll.u32 %v2457_v9, 16  ;;  %v2466_v9 = vld [vmem:[%s6632_s12 + $0x68] sm:$0x1] }
  0x34   : > { %5737 = vmatmul.mubr.msk.bf16.gmra.mrb[12].mxu0 %vm468_vm2, %v6209_v58  ;;  %v2587_v58 = vrot.slane %v2585_v49, 4  ;;  %v5185_v4 = vcombine.low %v2549_v51, %v2559_v62  ;;  %v2602_v31 = vrot.slane %v2601_v22, 4  ;;  %v2633_v34 = vshrl.u32 %v2458_v19, 16  ;;  %v6216_v49 = vld [vmem:[%s6597_s19 + $0x84] sm:$0xff]  }
  0x35   : > { %5758 = vmatprep.mubr.msk.bf16.mxu0 %vm468_vm2, %v5183_v17  ;;  %v2606_v17 = vrot.slane %v2604_v8, 5  ;;  %v2624_v37 = vrot.slane %v2622_v29, 4  ;;  %v2636_v38 = vshll.u32 %v2458_v19, 16  ;;  %v2642_v39 = vshll.u32 %v2459_v25, 16  ;;  %v2468_v19 = vld [vmem:[%s6632_s12 + $0x70] sm:$0xf] }
  0x36   : > { %5601 = vmatmul.mubr.msk.bf16.gmra.mrb[12].mxu1 %vm468_vm2, %v6211_v35  ;;  %v2591_v6 = vor.u32 %v2590_v59, %v2587_v58  ;;  %v2461_v35 = vld [vmem:[%s6632_s12 + $0x54] sm:$0xf]  ;;  %v2630_v42 = vrot.slane %v2628_v33, 5  ;;  %v2635_v43 = vrot.slane %v2633_v34, 4  ;;  %v2646_v44 = vshrl.u32 %v2459_v25, 16 }
  0x37   : > { %5604 = vmatprep.mubr.msk.bf16.mxu1 %vm468_vm2, %v6212_v41  ;;  %v2607_v41 = vsel %vm6654_vm5, %v2602_v31, %v2606_v17  ;;  %v2625_v47 = vor.u32 %v2624_v37, %v2620_v32  ;;  %v2638_v48 = vrot.slane %v2636_v38, 5  ;;  %v2644_v50 = vrot.slane %v2642_v39, 5  ;;  %v2464_v59 = vld [vmem:[%s6632_s12 + $0x60] sm:$0xf]  ;;  %v6219_v38 = vld [vmem:[%s6597_s19 + $0xa8] sm:$0xff]  }
  0x38   : > { %v2592_v16 = vrot.slane %v2591_v6, 4  ;;  %v2648_v51 = vrot.slane %v2646_v44, 4  ;;  %v2652_v52 = vshll.u32 %v2460_v30, 16  ;;  %v2657_v53 = vshrl.u32 %v2461_v35, 16  ;;  %v6223_v37 = vld [vmem:[%s7661_s4] sm:$0x18]  }
  0x39   : > { %v2626_v55 = vrot.slane %v2625_v47, 4  ;;  %v2639_v56 = vor.u32 %v2638_v48, %v2635_v43  ;;  %v2660_v58 = vshll.u32 %v2461_v35, 16  ;;  %v2666_v1 = vshll.u32 %v2462_v40, 16  ;;  %v2470_v48 = vld [vmem:[%s6632_s12 + $0x78] sm:$0xf] }
  0x3a   : > { %v2597_v27 = vsel %vm6654_vm5, %v2592_v16, %v2596_v11  ;;  %v2649_v62 = vor.u32 %v2648_v51, %v2644_v50  ;;  %v2654_v63 = vrot.slane %v2652_v52, 5  ;;  %v2659_v0 = vrot.slane %v2657_v53, 4  ;;  %v2471_v53 = vld [vmem:[%s6632_s12 + $0x7c] sm:$0xf] }
  0x3b   : > { %v5187_v45 = vcombine.low %v2597_v27, %v2607_v41  ;;  %v2640_v5 = vrot.slane %v2639_v56, 4  ;;  %v2662_v6 = vrot.slane %v2660_v58, 5  ;;  %v2670_v8 = vshrl.u32 %v2462_v40, 16  ;;  %v2472_v58 = vld [vmem:[%s6632_s12 + $0x80] sm:$0x1] }
  0x3c   : > { %5759 = vmatmul.mubr.msk.bf16.vlgmr.msra.gmra.mrb[0].mxu0 %vm468_vm2, %v5184_v36  ;;  %v2650_v11 = vrot.slane %v2649_v62, 4  ;;  %v2668_v12 = vrot.slane %v2666_v1, 5  ;;  %v2676_v13 = vshll.u32 %v2463_v57, 16  ;;  %v2684_v22 = vshll.u32 %v2464_v59, 16  ;;  %v2474_v1 = vld [vmem:[%s6632_s12 + $0x88] sm:$0xf] }
  0x3d   : > { %5791 = vmatpush3.bf16.msra.mxu0 %v3346_v28  ;;  %5762 = vmatprep.mubr.msk.bf16.mxu0 %vm468_vm2, %v5185_v4  ;;  %v2614_v28 = vrot.slane %v2612_v18, 5  ;;  %v2631_v4 = vsel %vm6654_vm5, %v2626_v55, %v2630_v42  ;;  %v2645_v15 = vsel %vm6654_vm5, %v2640_v5, %v2644_v50  ;;  %v2663_v16 = vor.u32 %v2662_v6, %v2659_v0  ;;  %v2469_v42 = vld [vmem:[%s6632_s12 + $0x74] sm:$0x1] }
  0x3e   : > { %5605 = vmatmul.mubr.msk.bf16.gmra.mrb[16].mxu1 %vm468_vm2, %v6213_v14  ;;  %v2467_v14 = vld [vmem:[%s6632_s12 + $0x6c] sm:$0xf]  ;;  %v2672_v17 = vrot.slane %v2670_v8, 4  ;;  %v2681_v18 = vshrl.u32 %v2464_v59, 16  ;;  %v2655_v20 = vsel %vm6654_vm5, %v2650_v11, %v2654_v63  ;;  %v2694_v30 = vshrl.u32 %v2465_v2, 16 }
  0x3f   : > { %v2615_v36 = vor.u32 %v2614_v28, %v2611_v23  ;;  %5608 = vmatprep.mubr.msk.bf16.mxu1 %vm468_vm2, %v6215_v21  ;;  %v2678_v21 = vrot.slane %v2676_v13, 5  ;;  %v2690_v23 = vshll.u32 %v2465_v2, 16  ;;  %v5189_v24 = vcombine.low %v2645_v15, %v2655_v20  ;;  %v2473_v59 = vld [vmem:[%s6632_s12 + $0x84] sm:$0xf] }
  0x40   : > { %v2664_v25 = vrot.slane %v2663_v16, 4  ;;  %v2683_v27 = vrot.slane %v2681_v18, 4  ;;  %v2686_v28 = vrot.slane %v2684_v22, 5  ;;  %v2700_v31 = vshll.u32 %v2466_v9, 16 }
  0x41   : > { %v2616_v46 = vrot.slane %v2615_v36, 4  ;;  %v2692_v29 = vrot.slane %v2690_v23, 5  ;;  %v2705_v35 = vshrl.u32 %v2467_v14, 16  ;;  %v2708_v36 = vshll.u32 %v2467_v14, 16 }
  0x42   : > { %v2669_v33 = vsel %vm6654_vm5, %v2664_v25, %v2668_v12  ;;  %v2687_v39 = vor.u32 %v2686_v28, %v2683_v27  ;;  %v2696_v40 = vrot.slane %v2694_v30, 4  ;;  %v2702_v41 = vrot.slane %v2700_v31, 5  ;;  %v2476_v27 = vld [vmem:[%s6632_s12 + $0x90] sm:$0xf] }
  0x43   : > { %v2621_v54 = vsel %vm6654_vm5, %v2616_v46, %v2620_v32  ;;  %v6218_v32 = vld [vmem:[%s6597_s19 + $0x9c] sm:$0xff]   ;;  %v2714_v43 = vshll.u32 %v2468_v19, 16  ;;  %v2710_v46 = vrot.slane %v2708_v36, 5  ;;  %v2718_v47 = vshrl.u32 %v2468_v19, 16 }
  0x44   : > { %5763 = vmatmul.mubr.msk.bf16.gmra.mrb[4].mxu0 %vm468_vm2, %v5186_v26  ;;  %v5188_v10 = vcombine.low %v2621_v54, %v2631_v4  ;;  %v2673_v26 = vor.u32 %v2672_v17, %v2668_v12  ;;  %v2688_v50 = vrot.slane %v2687_v39, 4  ;;  %v2697_v51 = vor.u32 %v2696_v40, %v2692_v29  ;;  %v6220_v12 = vld [vmem:[%s6597_s19 + $0xb4] sm:$0xff]   ;;  %v6221_v17 = vld [vmem:[%s6729_s18] sm:$0xff]  }
  0x45   : > { %5766 = vmatprep.mubr.msk.bf16.mxu0 %vm468_vm2, %v5187_v45  ;;  %v2707_v45 = vrot.slane %v2705_v35, 4  ;;  %v2716_v52 = vrot.slane %v2714_v43, 5  ;;  %v2720_v55 = vrot.slane %v2718_v47, 4  ;;  %v2724_v56 = vshll.u32 %v2469_v42, 16  ;;  %v2479_v42 = vld [vmem:[%s6632_s12 + $0x9c] sm:$0xf] }
  0x46   : > { %5609 = vmatmul.mubr.msk.bf16.gmra.mrb[20].mxu1 %vm468_vm2, %v6216_v49  ;;  %v2674_v34 = vrot.slane %v2673_v26, 4  ;;  %v1467_v57 = vrot.slane %v6223_v37, 3  ;;  %v2698_v62 = vrot.slane %v2697_v51, 4  ;;  %v2729_v63 = vshrl.u32 %v2470_v48, 16  ;;  %v2478_v37 = vld [vmem:[%s6632_s12 + $0x98] sm:$0x1] }
  0x47   : > { %5612 = vmatprep.mubr.msk.bf16.mxu1 %vm468_vm2, %v6217_v61  ;;  %v2711_v54 = vor.u32 %v2710_v46, %v2707_v45  ;;  %v2693_v61 = vsel %vm6654_vm5, %v2688_v50, %v2692_v29  ;;  %v2732_v0 = vshll.u32 %v2470_v48, 16  ;;  %v2721_v4 = vor.u32 %v2720_v55, %v2716_v52  ;;  %v6222_v43 = vld [vmem:[%s6729_s18 + $0xc] sm:$0xff]  }
  0x48   : > { %v2679_v44 = vsel %vm6654_vm5, %v2674_v34, %v2678_v21  ;;  %v2726_v5 = vrot.slane %v2724_v56, 5  ;;  %v6762_v6 = vand.u32 %v1467_v57, %v6579_v3  ;;  %v2703_v8 = vsel %vm6654_vm5, %v2698_v62, %v2702_v41  ;;  %v2475_v21 = vld [vmem:[%s6632_s12 + $0x8c] sm:$0x1]  ;;  %v2480_v56 = vld [vmem:[%s6632_s12 + $0xa0] sm:$0xf] }
  0x49   : > { %v5190_v49 = vcombine.low %v2669_v33, %v2679_v44  ;;  %v2712_v2 = vrot.slane %v2711_v54, 4  ;;  %v2731_v9 = vrot.slane %v2729_v63, 4  ;;  %v2738_v11 = vshll.u32 %v2471_v53, 16 }
  0x4a   : > { %v5191_v13 = vcombine.low %v2693_v61, %v2703_v8  ;;  %v2722_v15 = vrot.slane %v2721_v4, 4  ;;  %5654 = vmatprep.subr.bf16.mxu1 %v6762_v6  ;;  %v2742_v16 = vshrl.u32 %v2471_v53, 16  ;;  %v2748_v20 = vshll.u32 %v2472_v58, 16  ;;  %v6224_v58 = vld [vmem:[%s6729_s18 + $0x18] sm:$0xff]  }
  0x4b   : > { %v2717_v14 = vsel %vm6654_vm5, %v2712_v2, %v2716_v52  ;;  %v2740_v19 = vrot.slane %v2738_v11, 5  ;;  %v2753_v22 = vshrl.u32 %v2473_v59, 16  ;;  %v2756_v25 = vshll.u32 %v2473_v59, 16  ;;  %v2482_v11 = vld [vmem:[%s6632_s12 + $0xa8] sm:$0xf] }
  0x4c   : > { %5767 = vmatmul.mubr.msk.bf16.gmra.mrb[8].mxu0 %vm468_vm2, %v5188_v10  ;;  %v2734_v10 = vrot.slane %v2732_v0, 5  ;;  %v2727_v23 = vsel %vm6654_vm5, %v2722_v15, %v2726_v5  ;;  %v2762_v26 = vshll.u32 %v2474_v1, 16  ;;  %v2750_v30 = vrot.slane %v2748_v20, 5 }
  0x4d   : > { %5770 = vmatprep.mubr.msk.bf16.mxu0 %vm468_vm2, %v5189_v24  ;;  %v2744_v24 = vrot.slane %v2742_v16, 4  ;;  %v5192_v28 = vcombine.low %v2717_v14, %v2727_v23  ;;  %v2755_v31 = vrot.slane %v2753_v22, 4  ;;  %v2758_v34 = vrot.slane %v2756_v25, 5  ;;  %v2483_v16 = vld [vmem:[%s6632_s12 + $0xac] sm:$0xf]  ;;  %v6225_v23 = vld [vmem:[%s6729_s18 + $0x24] sm:$0xff]  }
  0x4e   : > { %5613 = vmatmul.mubr.msk.bf16.gmra.mrb[24].mxu1 %vm468_vm2, %v6218_v32  ;;  %v2735_v18 = vor.u32 %v2734_v10, %v2731_v9  ;;  %v2477_v32 = vld [vmem:[%s6632_s12 + $0x94] sm:$0xf]  ;;  %v2764_v35 = vrot.slane %v2762_v26, 5  ;;  %v2766_v36 = vshrl.u32 %v2474_v1, 16  ;;  %v2772_v39 = vshll.u32 %v2475_v21, 16 }
  0x4f   : > { %5616 = vmatprep.mubr.msk.bf16.mxu1 %vm468_vm2, %v6219_v38  ;;  %v2745_v33 = vor.u32 %v2744_v24, %v2740_v19  ;;  %v2777_v40 = vshrl.u32 %v2476_v27, 16  ;;  %v2780_v41 = vshll.u32 %v2476_v27, 16  ;;  %v2759_v45 = vor.u32 %v2758_v34, %v2755_v31  ;;  %v2481_v1 = vld [vmem:[%s6632_s12 + $0xa4] sm:$0x1]  ;;  %v2484_v21 = vld [vmem:[%s6632_s12 + $0xb0] sm:$0x1] }
  0x50   : > { %v2736_v29 = vrot.slane %v2735_v18, 4  ;;  %v2768_v46 = vrot.slane %v2766_v36, 4  ;;  %v2786_v47 = vshll.u32 %v2477_v32, 16  ;;  %v2774_v48 = vrot.slane %v2772_v39, 5  ;;  %v2485_v22 = vld [vmem:[%s6632_s12 + $0xb4] sm:$0xf] }
  0x51   : > { %v2746_v44 = vrot.slane %v2745_v33, 4  ;;  %v2782_v50 = vrot.slane %v2780_v41, 5  ;;  %v2790_v51 = vshrl.u32 %v2477_v32, 16  ;;  %v2760_v53 = vrot.slane %v2759_v45, 4  ;;  %v2487_v41 = vld [vmem:[%s6632_s12 + $0xbc] sm:$0x1] }
  0x52   : > { %v2741_v38 = vsel %vm6654_vm5, %v2736_v29, %v2740_v19  ;;  %v2769_v54 = vor.u32 %v2768_v46, %v2764_v35  ;;  %v2788_v55 = vrot.slane %v2786_v47, 5  ;;  %v2796_v62 = vshll.u32 %v2478_v37, 16  ;;  %v6226_v29 = vld [vmem:[%s6729_s18 + $0x30] sm:$0xff]  }
  0x53   : > { %v2751_v52 = vsel %vm6654_vm5, %v2746_v44, %v2750_v30  ;;  %v2792_v61 = vrot.slane %v2790_v51, 4  ;;  %v2765_v63 = vsel %vm6654_vm5, %v2760_v53, %v2764_v35  ;;  %v2801_v2 = vshrl.u32 %v2479_v42, 16 }
  0x54   : > { %5771 = vmatmul.mubr.msk.bf16.gmra.mrb[12].mxu0 %vm468_vm2, %v5190_v49  ;;  %v2779_v49 = vrot.slane %v2777_v40, 4  ;;  %v5193_v57 = vcombine.low %v2741_v38, %v2751_v52  ;;  %v2770_v0 = vrot.slane %v2769_v54, 4  ;;  %v2804_v4 = vshll.u32 %v2479_v42, 16 }
  0x55   : > { %5774 = vmatprep.mubr.msk.bf16.mxu0 %vm468_vm2, %v5191_v13  ;;  %v2793_v8 = vor.u32 %v2792_v61, %v2788_v55  ;;  %v2798_v9 = vrot.slane %v2796_v62, 5  ;;  %v2810_v10 = vshll.u32 %v2480_v56, 16  ;;  %v2803_v13 = vrot.slane %v2801_v2, 4  ;;  %v6227_v2 = vld [vmem:[%s6729_s18 + $0x3c] sm:$0xff]  }
  0x56   : > { %5617 = vmatmul.mubr.msk.bf16.gmra.mrb[28].mxu1 %vm468_vm2, %v6220_v12  ;;  %v2783_v59 = vor.u32 %v2782_v50, %v2779_v49  ;;  %v2775_v12 = vsel %vm6654_vm5, %v2770_v0, %v2774_v48  ;;  %v2806_v14 = vrot.slane %v2804_v4, 5  ;;  %v2814_v15 = vshrl.u32 %v2480_v56, 16 }
  0x57   : > { %5622 = vmatprep.mubr.msk.bf16.mxu1 %vm468_vm2, %v6221_v17  ;;  %v5194_v17 = vcombine.low %v2765_v63, %v2775_v12  ;;  %v2794_v19 = vrot.slane %v2793_v8, 4  ;;  %v2812_v20 = vrot.slane %v2810_v10, 5  ;;  %v2820_v26 = vshll.u32 %v2481_v1, 16  ;;  %v6234_v1 = vld [vmem:[%s7661_s4 + $0x8] ss:$0 sps:$4 sm:$0xcc]  }
  0x58   : > { %v2784_v5 = vrot.slane %v2783_v59, 4  ;;  %v2807_v24 = vor.u32 %v2806_v14, %v2803_v13  ;;  %v2816_v25 = vrot.slane %v2814_v15, 4  ;;  %v2825_v27 = vshrl.u32 %v2482_v11, 16  ;;  %v6228_v10 = vld [vmem:[%s6729_s18 + $0x48] sm:$0xff]  }
  0x59   : > { %v2828_v30 = vshll.u32 %v2482_v11, 16  ;;  %v2834_v31 = vshll.u32 %v2483_v16, 16  ;;  %v2838_v32 = vshrl.u32 %v2483_v16, 16  ;;  %v2822_v36 = vrot.slane %v2820_v26, 5  ;;  %v6230_v14 = vld [vmem:[%s6729_s18 + $0xc] sm:$0xff]  }
  0x5a   : > { %v2789_v18 = vsel %vm6654_vm5, %v2784_v5, %v2788_v55  ;;  %v2808_v34 = vrot.slane %v2807_v24, 4  ;;  %v2817_v35 = vor.u32 %v2816_v25, %v2812_v20  ;;  %v2827_v37 = vrot.slane %v2825_v27, 4  ;;  %v6231_v24 = vld [vmem:[%s6729_s18 + $0x18] sm:$0xff]   ;;  %v6235_v25 = vld [vmem:[%s6729_s18 + $0x24] sm:$0xff]   ;;  %v977_v26 = vld [vmem:[%s6729_s18] sm:$0xf] }
  0x5b   : > { %v2830_v38 = vrot.slane %v2828_v30, 5  ;;  %v2836_v39 = vrot.slane %v2834_v31, 5  ;;  %v2840_v40 = vrot.slane %v2838_v32, 4  ;;  %v2844_v44 = vshll.u32 %v2484_v21, 16  ;;  %v6229_v21 = vld [vmem:[%s6729_s18 + $0x54] sm:$0xff]   ;;  %v6233_v27 = vld [vmem:[%s6729_s18 + $0x6c] sm:$0xff]  }
  0x5c   : > { %5775 = vmatmul.mubr.msk.bf16.gmra.mrb[16].mxu0 %vm468_vm2, %v5192_v28  ;;  %v2486_v28 = vld [vmem:[%s6632_s12 + $0xb8] sm:$0xf]  ;;  %v2813_v42 = vsel %vm6654_vm5, %v2808_v34, %v2812_v20  ;;  %v2849_v45 = vshrl.u32 %v2485_v22, 16  ;;  %v2852_v48 = vshll.u32 %v2485_v22, 16  ;;  %v2868_v61 = vshll.u32 %v2487_v41, 16  ;;  %v6232_v22 = vld [vmem:[%s6729_s18 + $0x60] sm:$0xff]  }
  0x5d   : > { %5778 = vmatprep.mubr.msk.bf16.mxu0 %vm468_vm2, %v5193_v57  ;;  %v2831_v46 = vor.u32 %v2830_v38, %v2827_v37  ;;  %v2841_v47 = vor.u32 %v2840_v40, %v2836_v39  ;;  %v2858_v49 = vshll.u32 %v2486_v28, 16  ;;  %v2846_v51 = vrot.slane %v2844_v44, 5  ;;  %v6249_v30 = vld [vmem:[%s7661_s4 + $0x4] ss:$0 sps:$4 sm:$0x33]   ;;  %v6237_v31 = vld [vmem:[%s6729_s18 + $0x78] sm:$0xff]  }
  0x5e   : > { %5623 = vmatmul.mubr.msk.bf16.vlgmr.msra.gmra.mrb[0].mxu1 %vm468_vm2, %v6222_v43  ;;  %v2818_v43 = vrot.slane %v2817_v35, 4  ;;  %v2851_v52 = vrot.slane %v2849_v45, 4  ;;  %v2862_v53 = vshrl.u32 %v2486_v28, 16  ;;  %v2854_v57 = vrot.slane %v2852_v48, 5  ;;  %v978_v28 = vld [vmem:[%s6729_s18 + $0x4] sm:$0xf] }
  0x5f   : > { %5655 = vmatpush3.bf16.msra.mxu1 %v6762_v6  ;;  %5626 = vmatprep.mubr.msk.bf16.mxu1 %vm468_vm2, %v6224_v58  ;;  %v2799_v6 = vsel %vm6654_vm5, %v2794_v19, %v2798_v9  ;;  %v2832_v55 = vrot.slane %v2831_v46, 4  ;;  %v2842_v56 = vrot.slane %v2841_v47, 4  ;;  %v2860_v58 = vrot.slane %v2858_v49, 5  ;;  %v6239_v41 = vld [vmem:[%s6729_s18 + $0x3c] sm:$0xff]   ;;  %v983_v44 = vld [vmem:[%s6729_s18 + $0x18] sm:$0xf] }
  0x60   : > { %v5195_v33 = vcombine.low %v2789_v18, %v2799_v6  ;;  %v2823_v50 = vsel %vm6654_vm5, %v2818_v43, %v2822_v36  ;;  %v2864_v59 = vrot.slane %v2862_v53, 4  ;;  %v2855_v0 = vor.u32 %v2854_v57, %v2851_v52  ;;  %v981_v36 = vld [vmem:[%s6729_s18 + $0x10] sm:$0xf]  ;;  %v984_v49 = vld [vmem:[%s6729_s18 + $0x1c] sm:$0xf] }
  0x61   : > { %v5196_v54 = vcombine.low %v2813_v42, %v2823_v50  ;;  %v2837_v62 = vsel %vm6654_vm5, %v2832_v55, %v2836_v39  ;;  %v2847_v63 = vsel %vm6654_vm5, %v2842_v56, %v2846_v51  ;;  %v2870_v8 = vrot.slane %v2868_v61, 5  ;;  %v979_v42 = vld [vmem:[%s6729_s18 + $0x8] sm:$0x1]  ;;  %v982_v56 = vld [vmem:[%s6729_s18 + $0x14] sm:$0x1] }
  0x62   : > { %v5197_v4 = vcombine.low %v2837_v62, %v2847_v63  ;;  %v2865_v5 = vor.u32 %v2864_v59, %v2860_v58  ;;  %v2856_v9 = vrot.slane %v2855_v0, 4  ;;  %v3659_v11 = vshrl.u32 %v6234_v1, 16 }
  0x63   : > { %v3662_v12 = vshll.u32 %v6234_v1, 16  ;;  %v1029_v6 = vshrl.u32 %v977_v26, 16  ;;  %v1032_v32 = vshll.u32 %v977_v26, 16  ;;  %v1038_v34 = vshll.u32 %v978_v28, 16  ;;  %v988_v26 = vld [vmem:[%s6729_s18 + $0x2c] sm:$0x1] }
  0x64   : > { %5779 = vmatmul.mubr.msk.bf16.gmra.mrb[20].mxu0 %vm468_vm2, %v5194_v17  ;;  %v2866_v13 = vrot.slane %v2865_v5, 4  ;;  %v2861_v15 = vsel %vm6654_vm5, %v2856_v9, %v2860_v58  ;;  %v3661_v16 = vrot.slane %v3659_v11, 2  ;;  %v1042_v35 = vshrl.u32 %v978_v28, 16  ;;  %v6242_v28 = vld [vmem:[%s6729_s18 + $0x9c] sm:$0xff]  }
  0x65   : > { %5782 = vmatprep.mubr.msk.bf16.mxu0 %vm468_vm2, %v5195_v33  ;;  %v3664_v17 = vrot.slane %v3662_v12, 3  ;;  %v6236_v33 = vld [vmem:[%s6729_s18 + $0x30] sm:$0xff]   ;;  %v1829_v39 = vshrl.u32 %v6249_v30, 16  ;;  %v1831_v40 = vshll.u32 %v6249_v30, 16  ;;  %v1031_v43 = vrot.slane %v1029_v6, 4 }
  0x66   : > { %5627 = vmatmul.mubr.msk.bf16.gmra.mrb[4].mxu1 %vm468_vm2, %v6225_v23  ;;  %v2871_v18 = vsel %vm6654_vm5, %v2866_v13, %v2870_v8  ;;  %v1034_v45 = vrot.slane %v1032_v32, 5  ;;  %v1062_v46 = vshll.u32 %v981_v36, 16  ;;  %v1066_v47 = vshrl.u32 %v981_v36, 16  ;;  %v985_v12 = vld [vmem:[%s6729_s18 + $0x20] sm:$0x1]  ;;  %v6245_v32 = vld [vmem:[%s6729_s18 + $0xa8] sm:$0xff]  }
  0x67   : > { %5630 = vmatprep.mubr.msk.bf16.mxu1 %vm468_vm2, %v6226_v29  ;;  %v5198_v19 = vcombine.low %v2861_v15, %v2871_v18  ;;  %v3665_v20 = vor.u32 %v3664_v17, %v3661_v16  ;;  %v980_v29 = vld [vmem:[%s6729_s18 + $0xc] sm:$0xf]  ;;  %v1833_v48 = vrot.slane %v1831_v40, 1  ;;  %v6863_v50 = vrot.slane %v1038_v34, 5  ;;  %v986_v15 = vld [vmem:[%s6729_s18 + $0x24] sm:$0xf] }
  0x68   : > { %v1053_v37 = vshrl.u32 %v980_v29, 16  ;;  %v1056_v38 = vshll.u32 %v980_v29, 16  ;;  %v1044_v51 = vrot.slane %v1042_v35, 4  ;;  %v1077_v52 = vshrl.u32 %v983_v44, 16  ;;  %v987_v16 = vld [vmem:[%s6729_s18 + $0x28] sm:$0xf] }
  0x69   : > { %v3715_v23 = vand.u32 %v3665_v20, %v6579_v3  ;;  %v1080_v53 = vshll.u32 %v983_v44, 16  ;;  %v1048_v55 = vshll.u32 %v979_v42, 16  ;;  %v1834_v59 = vor.u32 %v1833_v48, %v1829_v39  ;;  %v6243_v17 = vld [vmem:[%s6729_s18 + $0x54] sm:$0xff]  }
  0x6a   : > { %v1055_v57 = vrot.slane %v1053_v37, 4  ;;  %v1058_v58 = vrot.slane %v1056_v38, 5  ;;  %v1086_v61 = vshll.u32 %v984_v49, 16  ;;  %v1090_v62 = vshrl.u32 %v984_v49, 16 }
  0x6b   : > { %5824 = vmatprep.subr.bf16.mxu0 %v3715_v23  ;;  %v1035_v63 = vor.u32 %v1034_v45, %v1031_v43  ;;  %v6869_v0 = vrot.slane %v1062_v46, 5  ;;  %v1068_v1 = vrot.slane %v1066_v47, 4  ;;  %v1045_v5 = vor.u32 %v1044_v51, %v6863_v50  ;;  %v992_v45 = vld [vmem:[%s6729_s18 + $0x3c] sm:$0xf]  ;;  %v993_v51 = vld [vmem:[%s6729_s18 + $0x40] sm:$0xf] }
  0x6c   : > { %5783 = vmatmul.mubr.msk.bf16.gmra.mrb[24].mxu0 %vm468_vm2, %v5196_v54  ;;  %v6238_v54 = vld [vmem:[%s6729_s18 + $0x84] sm:$0xff]   ;;  %v1079_v8 = vrot.slane %v1077_v52, 4  ;;  %v1082_v9 = vrot.slane %v1080_v53, 5  ;;  %v1072_v11 = vshll.u32 %v982_v56, 16  ;;  %v6879_v13 = vrot.slane %v1086_v61, 5  ;;  %v6247_v53 = vld [vmem:[%s6729_s18 + $0x6c] sm:$0xff]  }
  0x6d   : > { %5786 = vmatprep.mubr.msk.bf16.mxu0 %vm468_vm2, %v5197_v4  ;;  %v6241_v4 = vld [vmem:[%s6729_s18 + $0x90] sm:$0xff]   ;;  %v1036_v18 = vrot.slane %v1035_v63, 4  ;;  %v1059_v20 = vor.u32 %v1058_v58, %v1055_v57  ;;  %v1101_v29 = vshrl.u32 %v986_v15, 16  ;;  %v1104_v30 = vshll.u32 %v986_v15, 16  ;;  %v6244_v52 = vld [vmem:[%s6729_s18 + $0x60] sm:$0xff]  }
  0x6e   : > { %5631 = vmatmul.mubr.msk.bf16.gmra.mrb[8].mxu1 %vm468_vm2, %v6227_v2  ;;  %v6872_v2 = vand.u32 %v1834_v59, %v6579_v3  ;;  %v6891_v6 = vrot.slane %v1072_v11, 5  ;;  %v1114_v34 = vshrl.u32 %v987_v16, 16  ;;  %v1120_v49 = vshll.u32 %v988_v26, 16  ;;  %v991_v57 = vld [vmem:[%s6729_s18 + $0x38] sm:$0x1]  ;;  %v6250_v26 = vld [vmem:[%s6729_s18 + $0x84] sm:$0xff]  }
  0x6f   : > { %5634 = vmatprep.mubr.msk.bf16.mxu1 %vm468_vm2, %v6228_v10  ;;  %v6240_v10 = vld [vmem:[%s6729_s18 + $0x48] sm:$0xff]   ;;  %v6897_v37 = vrot.slane %v1059_v20, 4  ;;  %v1103_v46 = vrot.slane %v1101_v29, 4  ;;  %v1106_v47 = vrot.slane %v1104_v30, 5  ;;  %v1149_v61 = vshrl.u32 %v992_v45, 16  ;;  %v6248_v20 = vld [vmem:[%s6729_s18 + $0x78] sm:$0xff]  }
  0x70   : > { %5688 = vmatprep.subr.bf16.mxu1 %v6872_v2  ;;  %v1158_v63 = vshll.u32 %v993_v51, 16  ;;  %v1144_v15 = vshll.u32 %v991_v57, 16  ;;  %v998_v29 = vld [vmem:[%s6729_s18 + $0x54] sm:$0xf]  ;;  %v1001_v57 = vld [vmem:[%s6729_s18 + $0x60] sm:$0xf] }
  0x71   : > { %v1107_v11 = vor.u32 %v1106_v47, %v1103_v46 }
  0x73   : > { %v1108_v30 = vrot.slane %v1107_v11, 4 }
  0x74   : > { %5787 = vmatmul.mubr.msk.bf16.gmra.mrb[28].mxu0 %vm468_vm2, %v5198_v19  ;;  %v1050_v19 = vrot.slane %v1048_v55, 5 }
  0x75   : > { %5792 = vmatprep.mubr.msk.bf16.mxu0 %vm468_vm2, %v6230_v14  ;;  %v1092_v14 = vrot.slane %v1090_v62, 4  ;;  %v1152_v62 = vshll.u32 %v992_v45, 16 }
  0x76   : > { %5635 = vmatmul.mubr.msk.bf16.gmra.mrb[12].mxu1 %vm468_vm2, %v6229_v21  ;;  %v1069_v21 = vor.u32 %v1068_v1, %v6869_v0  ;;  %v1162_v1 = vshrl.u32 %v993_v51, 16 }
  0x77   : > { %5638 = vmatprep.mubr.msk.bf16.mxu1 %vm468_vm2, %v6232_v22  ;;  %v989_v22 = vld [vmem:[%s6729_s18 + $0x30] sm:$0xf] }
  0x78   : > { %v1125_v35 = vshrl.u32 %v989_v22, 16  ;;  %v1128_v36 = vshll.u32 %v989_v22, 16  ;;  %v6899_v38 = vrot.slane %v1069_v21, 4  ;;  %v1122_v22 = vrot.slane %v1120_v49, 5 }
  0x7a   : > { %v1127_v55 = vrot.slane %v1125_v35, 4  ;;  %v1130_v56 = vrot.slane %v1128_v36, 5 }
  0x7c   : > { %5793 = vmatmul.mubr.msk.bf16.vlgmr.msra.gmra.mrb[0].mxu0 %vm468_vm2, %v6231_v24  ;;  %v1083_v24 = vor.u32 %v1082_v9, %v1079_v8  ;;  %v1065_v8 = vsel %vm6654_vm5, %v6897_v37, %v6869_v0  ;;  %v1075_v9 = vsel %vm6654_vm5, %v6899_v38, %v6891_v6  ;;  %v1164_v6 = vrot.slane %v1162_v1, 4  ;;  %v997_v37 = vld [vmem:[%s6729_s18 + $0x50] sm:$0x1] }
  0x7d   : > { %5825 = vmatpush3.bf16.msra.mxu0 %v3715_v23  ;;  %5796 = vmatprep.mubr.msk.bf16.mxu0 %vm468_vm2, %v6235_v25  ;;  %v1046_v23 = vrot.slane %v1045_v5, 4  ;;  %v1096_v25 = vshll.u32 %v985_v12, 16  ;;  %v5085_v49 = vcombine.low %v1065_v8, %v1075_v9  ;;  %v1000_v9 = vld [vmem:[%s6729_s18 + $0x5c] sm:$0x1] }
  0x7e   : > { %5639 = vmatmul.mubr.msk.bf16.gmra.mrb[16].mxu1 %vm468_vm2, %v6233_v27  ;;  %v990_v27 = vld [vmem:[%s6729_s18 + $0x34] sm:$0xf]  ;;  %v6906_v43 = vrot.slane %v1083_v24, 4 }
  0x7f   : > { %5642 = vmatprep.mubr.msk.bf16.mxu1 %vm468_vm2, %v6237_v31  ;;  %v1110_v31 = vshll.u32 %v987_v16, 16  ;;  %v1134_v39 = vshll.u32 %v990_v27, 16  ;;  %v1138_v40 = vshrl.u32 %v990_v27, 16  ;;  %v1051_v42 = vsel %vm6654_vm5, %v1046_v23, %v1050_v19  ;;  %v6246_v16 = vld [vmem:[%s6729_s18 + $0xb4] sm:$0xff]   ;;  %v994_v23 = vld [vmem:[%s6729_s18 + $0x44] sm:$0x1] }
  0x80   : > { %v6908_v44 = vrot.slane %v1096_v25, 5  ;;  %v1089_v0 = vsel %vm6654_vm5, %v6906_v43, %v6879_v13  ;;  %v1151_v27 = vrot.slane %v1149_v61, 4  ;;  %v1168_v36 = vshll.u32 %v994_v23, 16  ;;  %v6251_v61 = vld [vmem:[%s6729_s18 + $0x90] sm:$0xff]  }
  0x81   : > { %v6911_v48 = vrot.slane %v1110_v31, 5  ;;  %v6920_v58 = vrot.slane %v1134_v39, 5  ;;  %v1140_v59 = vrot.slane %v1138_v40, 4  ;;  %v1200_v43 = vshll.u32 %v998_v29, 16 }
  0x83   : > { %v1202_v1 = vrot.slane %v1200_v43, 5  ;;  %v6254_v43 = vld [vmem:[%s6729_s18 + $0xb4] sm:$0xff]  }
  0x84   : > { %5797 = vmatmul.mubr.msk.bf16.gmra.mrb[4].mxu0 %vm468_vm2, %v6236_v33  ;;  %v1093_v33 = vor.u32 %v1092_v14, %v6879_v13  ;;  %v1131_v14 = vor.u32 %v1130_v56, %v1127_v55  ;;  %v6949_v13 = vrot.slane %v1158_v63, 5 }
  0x85   : > { %5800 = vmatprep.mubr.msk.bf16.mxu0 %vm468_vm2, %v6239_v41  ;;  %v1041_v41 = vsel %vm6654_vm5, %v1036_v18, %v6863_v50  ;;  %v1116_v50 = vrot.slane %v1114_v34, 4  ;;  %v999_v34 = vld [vmem:[%s6729_s18 + $0x58] sm:$0xf] }
  0x86   : > { %5643 = vmatmul.mubr.msk.bf16.gmra.mrb[20].mxu1 %vm468_vm2, %v6238_v54  ;;  %v6916_v54 = vrot.slane %v1093_v33, 4  ;;  %v5084_v5 = vcombine.low %v1041_v41, %v1051_v42  ;;  %v1146_v33 = vrot.slane %v1144_v15, 5  ;;  %v1197_v42 = vshrl.u32 %v998_v29, 16 }
  0x87   : > { %5646 = vmatprep.mubr.msk.bf16.mxu1 %vm468_vm2, %v6241_v4  ;;  %v995_v4 = vld [vmem:[%s6729_s18 + $0x48] sm:$0xf]  ;;  %v1117_v12 = vor.u32 %v1116_v50, %v6911_v48  ;;  %v1165_v45 = vor.u32 %v1164_v6, %v6949_v13  ;;  %v1206_v46 = vshll.u32 %v999_v34, 16  ;;  %v1210_v47 = vshrl.u32 %v999_v34, 16 }
  0x88   : > { %v1173_v18 = vshrl.u32 %v995_v4, 16  ;;  %v1176_v19 = vshll.u32 %v995_v4, 16  ;;  %v1099_v21 = vsel %vm6654_vm5, %v6916_v54, %v6908_v44  ;;  %v1199_v63 = vrot.slane %v1197_v42, 4  ;;  %v4342_v4 = vld [vmem:[%s7661_s4 + $0xc] sm:$0x3] }
  0x89   : > { %v1118_v31 = vrot.slane %v1117_v12, 4  ;;  %v5086_v51 = vcombine.low %v1089_v0, %v1099_v21  ;;  %v1166_v8 = vrot.slane %v1165_v45, 4  ;;  %v1212_v11 = vrot.slane %v1210_v47, 4  ;;  %v1004_v0 = vld [vmem:[%s6729_s18 + $0x6c] sm:$0xf] }
  0x8a   : > { %v1175_v38 = vrot.slane %v1173_v18, 4  ;;  %v1178_v39 = vrot.slane %v1176_v19, 5  ;;  %v1221_v12 = vshrl.u32 %v1001_v57, 16  ;;  %v6986_v21 = vand.u32 %v4342_v4, %v6579_v3  ;;  %v1003_v3 = vld [vmem:[%s6729_s18 + $0x68] sm:$0x1] }
  0x8b   : > { %v1123_v54 = vsel %vm6654_vm5, %v1118_v31, %v1122_v22  ;;  %v1245_v6 = vshrl.u32 %v1004_v0, 16  ;;  %v1007_v31 = vld [vmem:[%s6729_s18 + $0x78] sm:$0xf]  ;;  %v1006_v42 = vld [vmem:[%s6729_s18 + $0x74] sm:$0x1] }
  0x8c   : > { %5801 = vmatmul.mubr.msk.bf16.gmra.mrb[8].mxu0 %vm468_vm2, %v6240_v10  ;;  %v996_v10 = vld [vmem:[%s6729_s18 + $0x4c] sm:$0xf]  ;;  %v1179_v56 = vor.u32 %v1178_v39, %v1175_v38  ;;  %5858 = vmatprep.subr.bf16.mxu0 %v6986_v21  ;;  %v1272_v47 = vshll.u32 %v1007_v31, 16 }
  0x8d   : > { %5804 = vmatprep.mubr.msk.bf16.mxu0 %vm468_vm2, %v6243_v17  ;;  %v1141_v17 = vor.u32 %v1140_v59, %v6920_v58  ;;  %v1182_v24 = vshll.u32 %v996_v10, 16  ;;  %v1186_v25 = vshrl.u32 %v996_v10, 16  ;;  %v1002_v59 = vld [vmem:[%s6729_s18 + $0x64] sm:$0xf]  ;;  %v6980_v10 = vrot.slane %v1206_v46, 5 }
  0x8e   : > { %5647 = vmatmul.mubr.msk.bf16.gmra.mrb[24].mxu1 %vm468_vm2, %v6242_v28  ;;  %v1154_v28 = vrot.slane %v1152_v62, 5  ;;  %v1230_v15 = vshll.u32 %v1002_v59, 16  ;;  %v1180_v18 = vrot.slane %v1179_v56, 4  ;;  %v1247_v45 = vrot.slane %v1245_v6, 4 }
  0x8f   : > { %5650 = vmatprep.mubr.msk.bf16.mxu1 %vm468_vm2, %v6245_v32  ;;  %v1132_v32 = vrot.slane %v1131_v14, 4  ;;  %v1142_v35 = vrot.slane %v1141_v17, 4  ;;  %v6956_v40 = vrot.slane %v1182_v24, 5  ;;  %v1188_v41 = vrot.slane %v1186_v25, 4 }
  0x90   : > { %v1155_v44 = vor.u32 %v1154_v28, %v1151_v27  ;;  %v1224_v14 = vshll.u32 %v1001_v57, 16  ;;  %v1203_v24 = vor.u32 %v1202_v1, %v1199_v63  ;;  %v1216_v25 = vshll.u32 %v1000_v9, 16  ;;  %v1013_v63 = vld [vmem:[%s6729_s18 + $0x90] sm:$0xf] }
  0x91   : > { %v1137_v50 = vsel %vm6654_vm5, %v1132_v32, %v6920_v58  ;;  %v1147_v55 = vsel %vm6654_vm5, %v1142_v35, %v1146_v33  ;;  %v1189_v62 = vor.u32 %v1188_v41, %v6956_v40  ;;  %v1213_v28 = vor.u32 %v1212_v11, %v6980_v10  ;;  %v1009_v11 = vld [vmem:[%s6729_s18 + $0x80] sm:$0x1] }
  0x92   : > { %v1156_v58 = vrot.slane %v1155_v44, 4  ;;  %v5088_v22 = vcombine.low %v1137_v50, %v1147_v55  ;;  %v1226_v29 = vrot.slane %v1224_v14, 5  ;;  %v1185_v32 = vsel %vm6654_vm5, %v1180_v18, %v6956_v40  ;;  %v1008_v40 = vld [vmem:[%s6729_s18 + $0x7c] sm:$0xf]  ;;  %v6255_v18 = vld [vmem:[%s6729_s18 + $0xc0] sm:$0xff]  }
  0x93   : > { %v1190_v23 = vrot.slane %v1189_v62, 4  ;;  %v1248_v33 = vshll.u32 %v1004_v0, 16  ;;  %v7010_v38 = vrot.slane %v1203_v24, 4  ;;  %v7012_v39 = vrot.slane %v1216_v25, 5  ;;  %v6256_v24 = vld [vmem:[%s6597_s19 + $0xc] sm:$0xff]  }
  0x94   : > { %5805 = vmatmul.mubr.msk.bf16.gmra.mrb[12].mxu0 %vm468_vm2, %v6244_v52  ;;  %v1113_v52 = vsel %vm6654_vm5, %v1108_v30, %v6911_v48  ;;  %v1170_v48 = vrot.slane %v1168_v36, 5  ;;  %v7000_v30 = vrot.slane %v1230_v15, 5  ;;  %v6253_v36 = vld [vmem:[%s6729_s18 + $0xa8] sm:$0xff]   ;;  %v1240_v41 = vshll.u32 %v1003_v3, 16 }
  0x95   : > { %5808 = vmatprep.mubr.msk.bf16.mxu0 %vm468_vm2, %v6247_v53  ;;  %v1192_v53 = vshll.u32 %v997_v37, 16  ;;  %v5087_v17 = vcombine.low %v1113_v52, %v1123_v54  ;;  %v7016_v44 = vrot.slane %v1213_v28, 4  ;;  %v1269_v46 = vshrl.u32 %v1007_v31, 16  ;;  %v1011_v54 = vld [vmem:[%s6729_s18 + $0x88] sm:$0xf] }
  0x96   : > { %5651 = vmatmul.mubr.msk.bf16.gmra.mrb[28].mxu1 %vm468_vm2, %v6246_v16  ;;  %v1234_v16 = vshrl.u32 %v1002_v59, 16  ;;  %v1171_v27 = vsel %vm6654_vm5, %v1166_v8, %v1170_v48  ;;  %v1250_v50 = vrot.slane %v1248_v33, 5  ;;  %v1264_v57 = vshll.u32 %v1006_v42, 16 }
  0x97   : > { %5656 = vmatprep.mubr.msk.bf16.mxu1 %vm468_vm2, %v5084_v5  ;;  %v6252_v5 = vld [vmem:[%s6729_s18 + $0x9c] sm:$0xff]   ;;  %v1194_v19 = vrot.slane %v1192_v53, 5  ;;  %v1010_v53 = vld [vmem:[%s6729_s18 + $0x84] sm:$0xf]  ;;  %v1278_v48 = vshll.u32 %v1008_v40, 16  ;;  %v1282_v62 = vshrl.u32 %v1008_v40, 16 }
  0x98   : > { %v1271_v1 = vrot.slane %v1269_v46, 4  ;;  %v1274_v4 = vrot.slane %v1272_v47, 5  ;;  %v1242_v9 = vrot.slane %v1240_v41, 5  ;;  %v1306_v14 = vshrl.u32 %v1011_v54, 16 }
  0x99   : > { %v1195_v37 = vsel %vm6654_vm5, %v1190_v23, %v1194_v19  ;;  %v1251_v15 = vor.u32 %v1250_v50, %v1247_v45  ;;  %v7035_v0 = vrot.slane %v1264_v57, 5  ;;  %v7039_v19 = vrot.slane %v1278_v48, 5  ;;  %v1020_v48 = vld [vmem:[%s6729_s18 + $0xac] sm:$0xf] }
  0x9a   : > { %v5090_v59 = vcombine.low %v1185_v32, %v1195_v37  ;;  %v1320_v23 = vshll.u32 %v1013_v63, 16  ;;  %v1275_v25 = vor.u32 %v1274_v4, %v1271_v1  ;;  %v1219_v32 = vsel %vm6654_vm5, %v7016_v44, %v7012_v39  ;;  %v1018_v4 = vld [vmem:[%s6729_s18 + $0xa4] sm:$0x1] }
  0x9c   : > { %5809 = vmatmul.mubr.msk.bf16.gmra.mrb[16].mxu0 %vm468_vm2, %v6248_v20  ;;  %v1005_v20 = vld [vmem:[%s6729_s18 + $0x70] sm:$0xf]  ;;  %v1322_v42 = vrot.slane %v1320_v23, 5  ;;  %v1276_v39 = vrot.slane %v1275_v25, 4  ;;  %v1378_v23 = vshrl.u32 %v1020_v48, 16  ;;  %v1360_v25 = vshll.u32 %v1018_v4, 16 }
  0x9d   : > { %5812 = vmatprep.mubr.msk.bf16.mxu0 %vm468_vm2, %v6250_v26  ;;  %v1161_v26 = vsel %vm6654_vm5, %v1156_v58, %v6949_v13  ;;  %v1236_v13 = vrot.slane %v1234_v16, 4  ;;  %v1254_v34 = vshll.u32 %v1005_v20, 16  ;;  %v1258_v35 = vshrl.u32 %v1005_v20, 16 }
  0x9e   : > { %5657 = vmatmul.mubr.msk.bf16.vlgmr.msra.gmra.mrb[0].mxu1 %vm468_vm2, %v5085_v49  ;;  %v5089_v49 = vcombine.low %v1161_v26, %v1171_v27  ;;  %v1296_v58 = vshll.u32 %v1010_v53, 16  ;;  %v1284_v20 = vrot.slane %v1282_v62, 4  ;;  %v1288_v26 = vshll.u32 %v1009_v11, 16  ;;  %v1012_v27 = vld [vmem:[%s6729_s18 + $0x8c] sm:$0x1] }
  0x9f   : > { %5689 = vmatpush3.bf16.msra.mxu1 %v6872_v2  ;;  %5660 = vmatprep.mubr.msk.bf16.mxu1 %vm468_vm2, %v5086_v51  ;;  %v1223_v2 = vrot.slane %v1221_v12, 4  ;;  %v1237_v52 = vor.u32 %v1236_v13, %v7000_v30  ;;  %v7023_v55 = vrot.slane %v1254_v34, 5  ;;  %v1260_v56 = vrot.slane %v1258_v35, 4 }
  0xa0   : > { %5892 = vmatprep.subr.bf16.mxu1 %v6591_v7  ;;  %v1302_v12 = vshll.u32 %v1011_v54, 16  ;;  %v1298_v3 = vrot.slane %v1296_v58, 5  ;;  %v1252_v34 = vrot.slane %v1251_v15, 4  ;;  %v1290_v44 = vrot.slane %v1288_v26, 5  ;;  %v6257_v54 = vld [vmem:[%s6597_s19 + $0x18] sm:$0xff]  }
  0xa1   : > { %v1227_v51 = vor.u32 %v1226_v29, %v1223_v2  ;;  %v1261_v16 = vor.u32 %v1260_v56, %v7023_v55  ;;  %v1308_v2 = vrot.slane %v1306_v14, 4  ;;  %v1015_v29 = vld [vmem:[%s6729_s18 + $0x98] sm:$0x1]  ;;  %v1281_v15 = vsel %vm6654_vm5, %v1276_v39, %v7039_v19  ;;  %v1022_v26 = vld [vmem:[%s6729_s18 + $0xb4] sm:$0xf] }
  0xa2   : > { %v7043_v6 = vrot.slane %v1302_v12, 5  ;;  %v1257_v62 = vsel %vm6654_vm5, %v1252_v34, %v7023_v55 }
  0xa3   : > { %v1228_v8 = vrot.slane %v1227_v51, 4  ;;  %v1262_v35 = vrot.slane %v1261_v16, 4  ;;  %v1336_v51 = vshll.u32 %v1015_v29, 16 }
  0xa4   : > { %5813 = vmatmul.mubr.msk.bf16.gmra.mrb[20].mxu0 %vm468_vm2, %v6251_v61  ;;  %v1209_v61 = vsel %vm6654_vm5, %v7010_v38, %v6980_v10  ;;  %v1238_v10 = vrot.slane %v1237_v52, 4  ;;  %v1285_v38 = vor.u32 %v1284_v20, %v7039_v19  ;;  %v1309_v40 = vor.u32 %v1308_v2, %v7043_v6  ;;  %v6259_v2 = vld [vmem:[%s6597_s19 + $0x30] sm:$0xff]  }
  0xa5   : > { %5816 = vmatprep.mubr.msk.bf16.mxu0 %vm468_vm2, %v6252_v5  ;;  %v1293_v5 = vshrl.u32 %v1010_v53, 16  ;;  %v1233_v33 = vsel %vm6654_vm5, %v1228_v8, %v7000_v30  ;;  %v1312_v30 = vshll.u32 %v1012_v27, 16  ;;  %v1019_v53 = vld [vmem:[%s6729_s18 + $0xa8] sm:$0xf]  ;;  %v1267_v58 = vsel %vm6654_vm5, %v1262_v35, %v7035_v0 }
  0xa6   : > { %5661 = vmatmul.mubr.msk.bf16.gmra.mrb[4].mxu1 %vm468_vm2, %v5087_v17  ;;  %v1014_v17 = vld [vmem:[%s6729_s18 + $0x94] sm:$0xf]  ;;  %v1243_v37 = vsel %vm6654_vm5, %v1238_v10, %v1242_v9  ;;  %v1286_v56 = vrot.slane %v1285_v38, 4  ;;  %v1310_v8 = vrot.slane %v1309_v40, 4  ;;  %v1338_v12 = vrot.slane %v1336_v51, 5 }
  0xa7   : > { %5664 = vmatprep.mubr.msk.bf16.mxu1 %vm468_vm2, %v5088_v22  ;;  %v1317_v22 = vshrl.u32 %v1013_v63, 16  ;;  %v1295_v28 = vrot.slane %v1293_v5, 4  ;;  %v1326_v13 = vshll.u32 %v1014_v17, 16  ;;  %v1330_v31 = vshrl.u32 %v1014_v17, 16  ;;  %v6258_v63 = vld [vmem:[%s6597_s19 + $0x24] sm:$0xff]  }
  0xa8   : > { %v5092_v50 = vcombine.low %v1233_v33, %v1243_v37  ;;  %v1314_v9 = vrot.slane %v1312_v30, 5  ;;  %v1365_v10 = vshrl.u32 %v1019_v53, 16  ;;  %v1368_v55 = vshll.u32 %v1019_v53, 16 }
  0xa9   : > { %v1319_v41 = vrot.slane %v1317_v22, 4  ;;  %v1299_v45 = vor.u32 %v1298_v3, %v1295_v28  ;;  %v7062_v46 = vrot.slane %v1326_v13, 5  ;;  %v1332_v47 = vrot.slane %v1330_v31, 4  ;;  %v1023_v3 = vld [vmem:[%s6729_s18 + $0xb8] sm:$0xf]  ;;  %v6260_v31 = vld [vmem:[%s6597_s19 + $0x3c] sm:$0xff]  }
  0xaa   : > { %v1291_v16 = vsel %vm6654_vm5, %v1286_v56, %v1290_v44  ;;  %v1374_v22 = vshll.u32 %v1020_v48, 16  ;;  %v5093_v19 = vcombine.low %v1257_v62, %v1267_v58  ;;  %v1367_v27 = vrot.slane %v1365_v10, 4  ;;  %v1021_v13 = vld [vmem:[%s6729_s18 + $0xb0] sm:$0x1]  ;;  %v6261_v48 = vld [vmem:[%s6597_s19 + $0x48] sm:$0xff]  }
  0xab   : > { %v1323_v57 = vor.u32 %v1322_v42, %v1319_v41  ;;  %v1300_v1 = vrot.slane %v1299_v45, 4  ;;  %v1333_v11 = vor.u32 %v1332_v47, %v7062_v46  ;;  %v1370_v28 = vrot.slane %v1368_v55, 5  ;;  %v6263_v55 = vld [vmem:[%s6597_s19 + $0x60] sm:$0xff]  }
  0xac   : > { %5817 = vmatmul.mubr.msk.bf16.gmra.mrb[24].mxu0 %vm468_vm2, %v6253_v36  ;;  %v1016_v36 = vld [vmem:[%s6729_s18 + $0x9c] sm:$0xf]  ;;  %v5094_v29 = vcombine.low %v1281_v15, %v1291_v16  ;;  %v1380_v33 = vrot.slane %v1378_v23, 4  ;;  %v1315_v35 = vsel %vm6654_vm5, %v1310_v8, %v1314_v9  ;;  %v1389_v37 = vshrl.u32 %v1022_v26, 16  ;;  %v6264_v15 = vld [vmem:[%s6597_s19 + $0x6c] sm:$0xff]  }
  0xad   : > { %5820 = vmatprep.mubr.msk.bf16.mxu0 %vm468_vm2, %v6254_v43  ;;  %v1017_v43 = vld [vmem:[%s6729_s18 + $0xa0] sm:$0xf]  ;;  %v1341_v52 = vshrl.u32 %v1016_v36, 16  ;;  %v1324_v0 = vrot.slane %v1323_v57, 4  ;;  %v1305_v34 = vsel %vm6654_vm5, %v1300_v1, %v7043_v6  ;;  %v1392_v38 = vshll.u32 %v1022_v26, 16  ;;  %v6265_v23 = vld [vmem:[%s6597_s19 + $0x78] sm:$0xff]  }
  0xae   : > { %5665 = vmatmul.mubr.msk.bf16.gmra.mrb[8].mxu1 %vm468_vm2, %v5089_v49  ;;  %v5091_v49 = vcombine.low %v1209_v61, %v1219_v32  ;;  %v1350_v5 = vshll.u32 %v1017_v43, 16  ;;  %v1354_v61 = vshrl.u32 %v1017_v43, 16  ;;  %v1376_v32 = vrot.slane %v1374_v22, 5  ;;  %v5347_v22 = vld [vmem:[%s6729_s18 + $0x10] sm:$0xf] }
  0xaf   : > { %5668 = vmatprep.mubr.msk.bf16.mxu1 %vm468_vm2, %v5090_v59  ;;  %v1344_v59 = vshll.u32 %v1016_v36, 16  ;;  %v1343_v14 = vrot.slane %v1341_v52, 4  ;;  %v1329_v41 = vsel %vm6654_vm5, %v1324_v0, %v7062_v46  ;;  %v1398_v42 = vshll.u32 %v1023_v3, 16  ;;  %v1024_v46 = vld [vmem:[%s6729_s18 + $0xbc] sm:$0x1] }
  0xb0   : > { %v1356_v20 = vrot.slane %v1354_v61, 4  ;;  %v1402_v43 = vshrl.u32 %v1023_v3, 16  ;;  %v1371_v39 = vor.u32 %v1370_v28, %v1367_v27  ;;  %v1381_v44 = vor.u32 %v1380_v33, %v1376_v32  ;;  %v5349_v28 = vld [vmem:[%s6729_s18 + $0x18] sm:$0xf]  ;;  %v5350_v3 = vld [vmem:[%s6729_s18 + $0x1c] sm:$0xf] }
  0xb1   : > { %v1346_v17 = vrot.slane %v1344_v59, 5  ;;  %v1384_v45 = vshll.u32 %v1021_v13, 16  ;;  %v5095_v30 = vcombine.low %v1305_v34, %v1315_v35  ;;  %v1362_v51 = vrot.slane %v1360_v25, 5  ;;  %v6270_v34 = vld [vmem:[%s6632_s12 + $0x18] sm:$0xff]  }
  0xb2   : > { %v1391_v52 = vrot.slane %v1389_v37, 4  ;;  %v1394_v53 = vrot.slane %v1392_v38, 5  ;;  %v1372_v56 = vrot.slane %v1371_v39, 4  ;;  %v1382_v57 = vrot.slane %v1381_v44, 4  ;;  %v6269_v38 = vld [vmem:[%s6597_s19 + $0x90] sm:$0xff]  }
  0xb3   : > { %v1386_v59 = vrot.slane %v1384_v45, 5  ;;  %v1408_v61 = vshll.u32 %v1024_v46, 16  ;;  %v3972_v27 = vshrl.u32 %v5347_v22, 16  ;;  %v3986_v33 = vshll.u32 %v5349_v28, 16  ;;  %v5355_v45 = vld [vmem:[%s6729_s18 + $0x30] sm:$0xf] }
  0xb4   : > { %5821 = vmatmul.mubr.msk.bf16.gmra.mrb[28].mxu0 %vm468_vm2, %v6255_v18  ;;  %v7084_v18 = vrot.slane %v1350_v5, 5  ;;  %v1395_v4 = vor.u32 %v1394_v53, %v1391_v52  ;;  %v1377_v58 = vsel %vm6654_vm5, %v1372_v56, %v1376_v32  ;;  %v3983_v32 = vshrl.u32 %v5349_v28, 16 }
  0xb5   : > { %5826 = vmatprep.mubr.msk.bf16.mxu0 %vm468_vm2, %v6256_v24  ;;  %v1334_v24 = vrot.slane %v1333_v11, 4  ;;  %v1387_v8 = vsel %vm6654_vm5, %v1382_v57, %v1386_v59  ;;  %v1410_v10 = vrot.slane %v1408_v61, 5  ;;  %v3996_v37 = vshrl.u32 %v5350_v3, 16 }
  0xb6   : > { %5669 = vmatmul.mubr.msk.bf16.gmra.mrb[12].mxu1 %vm468_vm2, %v5091_v49  ;;  %v1357_v36 = vor.u32 %v1356_v20, %v7084_v18  ;;  %v5098_v11 = vcombine.low %v1377_v58, %v1387_v8  ;;  %v5346_v20 = vld [vmem:[%s6729_s18 + $0xc] sm:$0xf]  ;;  %v3985_v39 = vrot.slane %v3983_v32, 4  ;;  %v3988_v44 = vrot.slane %v3986_v33, 5  ;;  %v5361_v32 = vld [vmem:[%s6729_s18 + $0x48] sm:$0xf] }
  0xb7   : > { %5672 = vmatprep.mubr.msk.bf16.mxu1 %vm468_vm2, %v5092_v50  ;;  %v1339_v6 = vsel %vm6654_vm5, %v1334_v24, %v1338_v12  ;;  %v1404_v50 = vrot.slane %v1402_v43, 4  ;;  %v1396_v12 = vrot.slane %v1395_v4, 4  ;;  %v6268_v24 = vld [vmem:[%s6597_s19 + $0x84] sm:$0xff]   ;;  %v3959_v25 = vshrl.u32 %v5346_v20, 16  ;;  %v6275_v33 = vld [vmem:[%s6632_s12 + $0x3c] sm:$0xff]  }
  0xb8   : > { %v5096_v40 = vcombine.low %v1329_v41, %v1339_v6  ;;  %v1358_v49 = vrot.slane %v1357_v36, 4  ;;  %v3962_v26 = vshll.u32 %v5346_v20, 16  ;;  %v3992_v36 = vshll.u32 %v5350_v3, 16  ;;  %v6272_v41 = vld [vmem:[%s6597_s19 + $0x9c] sm:$0xff]   ;;  %v5353_v43 = vld [vmem:[%s6729_s18 + $0x28] sm:$0xf] }
  0xb9   : > { %v3961_v13 = vrot.slane %v3959_v25, 4  ;;  %v3998_v46 = vrot.slane %v3996_v37, 4  ;;  %v4034_v56 = vshll.u32 %v5355_v45, 16 }
  0xba   : > { %v1363_v1 = vsel %vm6654_vm5, %v1358_v49, %v1362_v51  ;;  %v5351_v49 = vld [vmem:[%s6729_s18 + $0x20] sm:$0x1]  ;;  %v7162_v51 = vrot.slane %v3992_v36, 5 }
  0xbb   : > { %v4002_v4 = vshll.u32 %v5351_v49, 16 }
  0xbc   : > { %5827 = vmatmul.mubr.msk.bf16.vlgmr.msra.gmra.mrb[0].mxu0 %vm468_vm2, %v6257_v54  ;;  %v1400_v54 = vrot.slane %v1398_v42, 5  ;;  %v5352_v42 = vld [vmem:[%s6729_s18 + $0x24] sm:$0xf]  ;;  %v3999_v8 = vor.u32 %v3998_v46, %v7162_v51 }
  0xbd   : > { %5859 = vmatpush3.bf16.msra.mxu0 %v6986_v21  ;;  %5830 = vmatprep.mubr.msk.bf16.mxu0 %vm468_vm2, %v6258_v63  ;;  %v1347_v21 = vor.u32 %v1346_v17, %v1343_v14  ;;  %v6262_v63 = vld [vmem:[%s6597_s19 + $0x54] sm:$0xff]   ;;  %v4007_v52 = vshrl.u32 %v5352_v42, 16  ;;  %v4010_v53 = vshll.u32 %v5352_v42, 16 }
  0xbe   : > { %5673 = vmatmul.mubr.msk.bf16.gmra.mrb[16].mxu1 %vm468_vm2, %v5093_v19  ;;  %v1405_v5 = vor.u32 %v1404_v50, %v1400_v54  ;;  %v1401_v16 = vsel %vm6654_vm5, %v1396_v12, %v1400_v54  ;;  %v3968_v19 = vshll.u32 %v5347_v22, 16  ;;  %v4016_v54 = vshll.u32 %v5353_v43, 16  ;;  %v6276_v12 = vld [vmem:[%s6597_s19 + $0xb4] sm:$0xff]  }
  0xbf   : > { %5676 = vmatprep.mubr.msk.bf16.mxu1 %vm468_vm2, %v5094_v29  ;;  %v1348_v47 = vrot.slane %v1347_v21, 4  ;;  %v5348_v29 = vld [vmem:[%s6729_s18 + $0x14] sm:$0x1]  ;;  %v3974_v21 = vrot.slane %v3972_v27, 4  ;;  %v4020_v50 = vshrl.u32 %v5353_v43, 16 }
  0xc0   : > { %v1406_v14 = vrot.slane %v1405_v5, 4  ;;  %v7149_v35 = vrot.slane %v3968_v19, 5  ;;  %v3978_v6 = vshll.u32 %v5348_v29, 16  ;;  %v6273_v5 = vld [vmem:[%s6597_s19 + $0xa8] sm:$0xff]  }
  0xc1   : > { %v1353_v62 = vsel %vm6654_vm5, %v1348_v47, %v7084_v18  ;;  %v6266_v18 = vld [vmem:[%s6632_s12] sm:$0xff]   ;;  %v5362_v43 = vld [vmem:[%s6729_s18 + $0x4c] sm:$0xf] }
  0xc2   : > { %v5097_v9 = vcombine.low %v1353_v62, %v1363_v1  ;;  %v1411_v0 = vsel %vm6654_vm5, %v1406_v14, %v1410_v10  ;;  %v3975_v47 = vor.u32 %v3974_v21, %v7149_v35  ;;  %v6274_v62 = vld [vmem:[%s6632_s12 + $0x30] sm:$0xff]   ;;  %v3989_v1 = vor.u32 %v3988_v44, %v3985_v39 }
  0xc3   : > { %v5099_v17 = vcombine.low %v1401_v16, %v1411_v0  ;;  %v4009_v14 = vrot.slane %v4007_v52, 4  ;;  %v4012_v10 = vrot.slane %v4010_v53, 5  ;;  %v5359_v16 = vld [vmem:[%s6729_s18 + $0x40] sm:$0xf]  ;;  %v5357_v0 = vld [vmem:[%s6729_s18 + $0x38] sm:$0x1] }
  0xc4   : > { %5831 = vmatmul.mubr.msk.bf16.gmra.mrb[4].mxu0 %vm468_vm2, %v6259_v2  ;;  %v6267_v2 = vld [vmem:[%s6632_s12 + $0xc] sm:$0xff]   ;;  %v3976_v58 = vrot.slane %v3975_v47, 4  ;;  %v4064_v28 = vshll.u32 %v5359_v16, 16  ;;  %v4068_v3 = vshrl.u32 %v5359_v16, 16  ;;  %v4050_v36 = vshll.u32 %v5357_v0, 16  ;;  %v6277_v47 = vld [vmem:[%s6597_s19 + $0xc0] sm:$0xff]  }
  0xc5   : > { %5834 = vmatprep.mubr.msk.bf16.mxu0 %vm468_vm2, %v6260_v31  ;;  %v3964_v31 = vrot.slane %v3962_v26, 5  ;;  %v4013_v29 = vor.u32 %v4012_v10, %v4009_v14  ;;  %v5367_v0 = vld [vmem:[%s6729_s18 + $0x60] sm:$0xf] }
  0xc6   : > { %5677 = vmatmul.mubr.msk.bf16.gmra.mrb[20].mxu1 %vm468_vm2, %v5095_v30  ;;  %v5356_v30 = vld [vmem:[%s6729_s18 + $0x34] sm:$0xf]  ;;  %v7198_v39 = vrot.slane %v4064_v28, 5  ;;  %v4070_v44 = vrot.slane %v4068_v3, 4  ;;  %v5366_v28 = vld [vmem:[%s6729_s18 + $0x5c] sm:$0x1] }
  0xc7   : > { %5680 = vmatprep.mubr.msk.bf16.mxu1 %vm468_vm2, %v5096_v40  ;;  %v3965_v40 = vor.u32 %v3964_v31, %v3961_v13  ;;  %v4040_v57 = vshll.u32 %v5356_v30, 16  ;;  %v4044_v59 = vshrl.u32 %v5356_v30, 16  ;;  %v4082_v30 = vshll.u32 %v5361_v32, 16 }
  0xc8   : > { %v4014_v46 = vrot.slane %v4013_v29, 4  ;;  %v4127_v29 = vshrl.u32 %v5367_v0, 16 }
  0xc9   : > { %v3966_v61 = vrot.slane %v3965_v40, 4  ;;  %v7177_v20 = vrot.slane %v4040_v57, 5  ;;  %v4046_v22 = vrot.slane %v4044_v59, 4  ;;  %v5364_v40 = vld [vmem:[%s6729_s18 + $0x54] sm:$0xf]  ;;  %v4088_v59 = vshll.u32 %v5362_v43, 16 }
  0xca   : > { %v5365_v57 = vld [vmem:[%s6729_s18 + $0x58] sm:$0xf] }
  0xcb   : > { %v3971_v19 = vsel %vm6654_vm5, %v3966_v61, %v7149_v35  ;;  %v4047_v21 = vor.u32 %v4046_v22, %v7177_v20  ;;  %v4084_v61 = vrot.slane %v4082_v30, 5 }
  0xcc   : > { %5835 = vmatmul.mubr.msk.bf16.gmra.mrb[8].mxu0 %vm468_vm2, %v6261_v48  ;;  %v6271_v48 = vld [vmem:[%s6632_s12 + $0x24] sm:$0xff]  }
  0xcd   : > { %5838 = vmatprep.mubr.msk.bf16.mxu0 %vm468_vm2, %v6262_v63  ;;  %v3980_v63 = vrot.slane %v3978_v6, 5 }
  0xce   : > { %5681 = vmatmul.mubr.msk.bf16.gmra.mrb[24].mxu1 %vm468_vm2, %v5097_v9  ;;  %v5354_v9 = vld [vmem:[%s6729_s18 + $0x2c] sm:$0x1] }
  0xcf   : > { %5684 = vmatprep.mubr.msk.bf16.mxu1 %vm468_vm2, %v5098_v11  ;;  %v5358_v11 = vld [vmem:[%s6729_s18 + $0x3c] sm:$0xf]  ;;  %v3981_v27 = vsel %vm6654_vm5, %v3976_v58, %v3980_v63  ;;  %v4026_v31 = vshll.u32 %v5354_v9, 16  ;;  %v4106_v63 = vshll.u32 %v5364_v40, 16  ;;  %v6279_v58 = vld [vmem:[%s6632_s12 + $0x54] sm:$0xff]  }
  0xd0   : > { %v4055_v25 = vshrl.u32 %v5358_v11, 16  ;;  %v4058_v26 = vshll.u32 %v5358_v11, 16  ;;  %v5394_v37 = vcombine.low %v3971_v19, %v3981_v27  ;;  %v4112_v11 = vshll.u32 %v5365_v57, 16  ;;  %v5370_v27 = vld [vmem:[%s6729_s18 + $0x6c] sm:$0xf] }
  0xd1   : > { %v4028_v53 = vrot.slane %v4026_v31, 5  ;;  %v4108_v22 = vrot.slane %v4106_v63, 5 }
  0xd2   : > { %v4057_v6 = vrot.slane %v4055_v25, 4  ;;  %v4060_v42 = vrot.slane %v4058_v26, 5  ;;  %v7231_v3 = vrot.slane %v4112_v11, 5  ;;  %v5372_v11 = vld [vmem:[%s6729_s18 + $0x74] sm:$0x1] }
  0xd4   : > { %5839 = vmatmul.mubr.msk.bf16.gmra.mrb[12].mxu0 %vm468_vm2, %v6263_v55  ;;  %v7173_v55 = vrot.slane %v4016_v54, 5  ;;  %v5363_v54 = vld [vmem:[%s6729_s18 + $0x50] sm:$0x1] }
  0xd5   : > { %5842 = vmatprep.mubr.msk.bf16.mxu0 %vm468_vm2, %v6264_v15  ;;  %v4022_v15 = vrot.slane %v4020_v50, 4  ;;  %v4048_v50 = vrot.slane %v4047_v21, 4  ;;  %v4098_v16 = vshll.u32 %v5363_v54, 16 }
  0xd6   : > { %5685 = vmatmul.mubr.msk.bf16.gmra.mrb[28].mxu1 %vm468_vm2, %v5099_v17  ;;  %v4019_v9 = vsel %vm6654_vm5, %v4014_v46, %v7173_v55  ;;  %v5369_v46 = vld [vmem:[%s6729_s18 + $0x68] sm:$0x1] }
  0xd7   : > { %5690 = vmatprep.mubr.msk.bf16.mxu1 %vm468_vm2, %v6266_v18  ;;  %v4036_v18 = vrot.slane %v4034_v56, 5  ;;  %v4023_v13 = vor.u32 %v4022_v15, %v7173_v55  ;;  %v7223_v55 = vrot.slane %v4088_v59, 5  ;;  %v6282_v59 = vld [vmem:[%s6632_s12 + $0x78] sm:$0xff]  }
  0xd9   : > { %v4024_v52 = vrot.slane %v4023_v13, 4  ;;  %v4130_v13 = vshll.u32 %v5367_v0, 16 }
  0xdb   : > { %v4029_v14 = vsel %vm6654_vm5, %v4024_v52, %v4028_v53 }
  0xdc   : > { %5843 = vmatmul.mubr.msk.bf16.gmra.mrb[16].mxu0 %vm468_vm2, %v6265_v23  ;;  %v3990_v23 = vrot.slane %v3989_v1, 4  ;;  %v4061_v1 = vor.u32 %v4060_v42, %v4057_v6  ;;  %v5396_v31 = vcombine.low %v4019_v9, %v4029_v14 }
  0xdd   : > { %5846 = vmatprep.mubr.msk.bf16.mxu0 %vm468_vm2, %v6268_v24  ;;  %v4004_v24 = vrot.slane %v4002_v4, 5  ;;  %v4071_v4 = vor.u32 %v4070_v44, %v7198_v39  ;;  %v5373_v44 = vld [vmem:[%s6729_s18 + $0x78] sm:$0xf] }
  0xde   : > { %5691 = vmatmul.mubr.msk.bf16.vlgmr.msra.gmra.mrb[0].mxu1 %vm468_vm2, %v6267_v2  ;;  %v4000_v2 = vrot.slane %v3999_v8, 4  ;;  %v4062_v26 = vrot.slane %v4061_v1, 4 }
  0xdf   : > { %5893 = vmatpush3.bf16.msra.mxu1 %v6591_v7  ;;  %5694 = vmatprep.mubr.msk.bf16.mxu1 %vm468_vm2, %v6270_v34  ;;  %v4031_v7 = vshrl.u32 %v5355_v45, 16  ;;  %v6278_v34 = vld [vmem:[%s6632_s12 + $0x48] sm:$0xff]   ;;  %v4079_v45 = vshrl.u32 %v5361_v32, 16  ;;  %v7233_v32 = vrot.slane %v4098_v16, 5 }
  0xe0   : > { %v4005_v49 = vsel %vm6654_vm5, %v4000_v2, %v4004_v24  ;;  %v6280_v24 = vld [vmem:[%s6632_s12 + $0x60] sm:$0xff]   ;;  %v4067_v6 = vsel %vm6654_vm5, %v4062_v26, %v7198_v39 }
  0xe1   : > { %v4033_v17 = vrot.slane %v4031_v7, 4  ;;  %v4052_v7 = vrot.slane %v4050_v36, 5 }
  0xe3   : > { %v4037_v35 = vor.u32 %v4036_v18, %v4033_v17  ;;  %v4053_v25 = vsel %vm6654_vm5, %v4048_v50, %v4052_v7 }
  0xe4   : > { %5847 = vmatmul.mubr.msk.bf16.gmra.mrb[20].mxu0 %vm468_vm2, %v6269_v38  ;;  %v3995_v38 = vsel %vm6654_vm5, %v3990_v23, %v7162_v51  ;;  %v5368_v23 = vld [vmem:[%s6729_s18 + $0x64] sm:$0xf] }
  0xe5   : > { %5850 = vmatprep.mubr.msk.bf16.mxu0 %vm468_vm2, %v6272_v41  ;;  %v5360_v41 = vld [vmem:[%s6729_s18 + $0x44] sm:$0x1]  ;;  %v4038_v51 = vrot.slane %v4037_v35, 4  ;;  %v5395_v8 = vcombine.low %v3995_v38, %v4005_v49  ;;  %v5371_v35 = vld [vmem:[%s6729_s18 + $0x70] sm:$0xf]  ;;  %v4154_v38 = vshll.u32 %v5370_v27, 16 }
  0xe6   : > { %5695 = vmatmul.mubr.msk.bf16.gmra.mrb[4].mxu1 %vm468_vm2, %v6271_v48  ;;  %v4074_v56 = vshll.u32 %v5360_v41, 16  ;;  %v4092_v48 = vshrl.u32 %v5362_v43, 16  ;;  %v4122_v43 = vshll.u32 %v5366_v28, 16  ;;  %v5374_v49 = vld [vmem:[%s6729_s18 + $0x7c] sm:$0xf]  ;;  %v4160_v53 = vshll.u32 %v5371_v35, 16 }
  0xe7   : > { %5698 = vmatprep.mubr.msk.bf16.mxu1 %vm468_vm2, %v6274_v62  ;;  %v4103_v62 = vshrl.u32 %v5364_v40, 16  ;;  %v4043_v10 = vsel %vm6654_vm5, %v4038_v51, %v7177_v20  ;;  %v4072_v20 = vrot.slane %v4071_v4, 4  ;;  %v4129_v40 = vrot.slane %v4127_v29, 4  ;;  %v6281_v51 = vld [vmem:[%s6632_s12 + $0x6c] sm:$0xff]  }
  0xe8   : > { %v7219_v15 = vrot.slane %v4074_v56, 5  ;;  %v4094_v17 = vrot.slane %v4092_v48, 4  ;;  %v5397_v41 = vcombine.low %v4043_v10, %v4053_v25  ;;  %v4164_v54 = vshrl.u32 %v5371_v35, 16 }
  0xe9   : > { %v4105_v18 = vrot.slane %v4103_v62, 4  ;;  %v4175_v48 = vshrl.u32 %v5373_v44, 16  ;;  %v4178_v62 = vshll.u32 %v5373_v44, 16  ;;  %v4184_v63 = vshll.u32 %v5374_v49, 16  ;;  %v5380_v44 = vld [vmem:[%s6729_s18 + $0x94] sm:$0xf] }
  0xea   : > { %v4095_v21 = vor.u32 %v4094_v17, %v7223_v55  ;;  %v4188_v1 = vshrl.u32 %v5374_v49, 16  ;;  %v4166_v14 = vrot.slane %v4164_v54, 4  ;;  %v5376_v17 = vld [vmem:[%s6729_s18 + $0x84] sm:$0xf]  ;;  %v5382_v49 = vld [vmem:[%s6729_s18 + $0x9c] sm:$0xf] }
  0xeb   : > { %v4109_v36 = vor.u32 %v4108_v22, %v4105_v18  ;;  %v4177_v18 = vrot.slane %v4175_v48, 4  ;;  %v4180_v22 = vrot.slane %v4178_v62, 5  ;;  %v4202_v29 = vshll.u32 %v5376_v17, 16 }
  0xec   : > { %5851 = vmatmul.mubr.msk.bf16.gmra.mrb[24].mxu0 %vm468_vm2, %v6273_v5  ;;  %v4081_v5 = vrot.slane %v4079_v45, 4  ;;  %v4077_v45 = vsel %vm6654_vm5, %v4072_v20, %v7219_v15  ;;  %v4096_v50 = vrot.slane %v4095_v21, 4  ;;  %v4247_v48 = vshrl.u32 %v5382_v49, 16 }
  0xed   : > { %5854 = vmatprep.mubr.msk.bf16.mxu0 %vm468_vm2, %v6276_v12  ;;  %v4116_v12 = vshrl.u32 %v5365_v57, 16  ;;  %v4110_v7 = vrot.slane %v4109_v36, 4  ;;  %v4156_v57 = vrot.slane %v4154_v38, 5  ;;  %v4181_v35 = vor.u32 %v4180_v22, %v4177_v18  ;;  %v5384_v18 = vld [vmem:[%s6729_s18 + $0xa4] sm:$0x1] }
  0xee   : > { %5699 = vmatmul.mubr.msk.bf16.gmra.mrb[8].mxu1 %vm468_vm2, %v6275_v33  ;;  %v4085_v19 = vor.u32 %v4084_v61, %v4081_v5  ;;  %v4136_v33 = vshll.u32 %v5368_v23, 16  ;;  %v4124_v5 = vrot.slane %v4122_v43, 5  ;;  %v4101_v15 = vsel %vm6654_vm5, %v4096_v50, %v7233_v32  ;;  %v5378_v43 = vld [vmem:[%s6729_s18 + $0x8c] sm:$0x1] }
  0xef   : > { %5702 = vmatprep.mubr.msk.bf16.mxu1 %vm468_vm2, %v6278_v34  ;;  %v4118_v2 = vrot.slane %v4116_v12, 4  ;;  %v4140_v34 = vshrl.u32 %v5368_v23, 16  ;;  %v7259_v12 = vrot.slane %v4160_v53, 5  ;;  %v4115_v16 = vsel %vm6654_vm5, %v4110_v7, %v7231_v3 }
  0xf0   : > { %v7242_v42 = vrot.slane %v4085_v19, 4  ;;  %v7252_v52 = vrot.slane %v4136_v33, 5  ;;  %v7274_v23 = vrot.slane %v4184_v63, 5  ;;  %v4170_v19 = vshll.u32 %v5372_v11, 16  ;;  %v6284_v33 = vld [vmem:[%s6632_s12 + $0x90] sm:$0xff]  }
  0xf1   : > { %v4119_v30 = vor.u32 %v4118_v2, %v7231_v3  ;;  %v4142_v39 = vrot.slane %v4140_v34, 4  ;;  %v4167_v3 = vor.u32 %v4166_v14, %v7259_v12  ;;  %v4199_v2 = vshrl.u32 %v5376_v17, 16  ;;  %v6286_v14 = vld [vmem:[%s6632_s12 + $0xa8] sm:$0xff]  }
  0xf2   : > { %v4091_v10 = vsel %vm6654_vm5, %v7242_v42, %v7223_v55  ;;  %v5377_v55 = vld [vmem:[%s6729_s18 + $0x88] sm:$0xf]  ;;  %v4172_v42 = vrot.slane %v4170_v19, 5  ;;  %v4182_v50 = vrot.slane %v4181_v35, 4  ;;  %v4250_v62 = vshll.u32 %v5382_v49, 16 }
  0xf3   : > { %v4120_v4 = vrot.slane %v4119_v30, 4  ;;  %v4143_v9 = vor.u32 %v4142_v39, %v7252_v52  ;;  %v4212_v32 = vshrl.u32 %v5377_v55, 16  ;;  %v5399_v38 = vcombine.low %v4091_v10, %v4101_v15  ;;  %v5385_v19 = vld [vmem:[%s6729_s18 + $0xa8] sm:$0xf]  ;;  %v5389_v35 = vld [vmem:[%s6729_s18 + $0xb8] sm:$0xf] }
  0xf4   : > { %5855 = vmatmul.mubr.msk.bf16.gmra.mrb[28].mxu0 %vm468_vm2, %v6277_v47  ;;  %v4132_v47 = vrot.slane %v4130_v13, 5  ;;  %v6283_v13 = vld [vmem:[%s6632_s12 + $0x84] sm:$0xff]   ;;  %v4168_v30 = vrot.slane %v4167_v3, 4  ;;  %v4187_v10 = vsel %vm6654_vm5, %v4182_v50, %v7274_v23  ;;  %v4249_v22 = vrot.slane %v4247_v48, 4  ;;  %v5387_v50 = vld [vmem:[%s6729_s18 + $0xb0] sm:$0x1] }
  0xf5   : > { %5860 = vmatprep.mubr.msk.bf16.mxu0 %vm468_vm2, %v5394_v37  ;;  %v4151_v37 = vshrl.u32 %v5370_v27, 16  ;;  %v4125_v25 = vsel %vm6654_vm5, %v4120_v4, %v4124_v5  ;;  %v5375_v27 = vld [vmem:[%s6729_s18 + $0x80] sm:$0x1]  ;;  %v4144_v28 = vrot.slane %v4143_v9, 4  ;;  %v4214_v39 = vrot.slane %v4212_v32, 4 }
  0xf6   : > { %5703 = vmatmul.mubr.msk.bf16.gmra.mrb[12].mxu1 %vm468_vm2, %v6279_v58  ;;  %v4133_v61 = vor.u32 %v4132_v47, %v4129_v40  ;;  %v4146_v58 = vshll.u32 %v5369_v46, 16  ;;  %v4194_v36 = vshll.u32 %v5375_v27, 16  ;;  %v4201_v40 = vrot.slane %v4199_v2, 4  ;;  %v5386_v2 = vld [vmem:[%s6729_s18 + $0xac] sm:$0xf] }
  0xf7   : > { %5706 = vmatprep.mubr.msk.bf16.mxu1 %vm468_vm2, %v6280_v24  ;;  %v4153_v56 = vrot.slane %v4151_v37, 4  ;;  %v4190_v24 = vrot.slane %v4188_v1, 4  ;;  %v5379_v37 = vld [vmem:[%s6729_s18 + $0x90] sm:$0xf]  ;;  %v4204_v47 = vrot.slane %v4202_v29, 5  ;;  %v4173_v63 = vsel %vm6654_vm5, %v4168_v30, %v4172_v42 }
  0xf8   : > { %v4134_v26 = vrot.slane %v4133_v61, 4  ;;  %v4148_v20 = vrot.slane %v4146_v58, 5  ;;  %v4223_v53 = vshrl.u32 %v5379_v37, 16  ;;  %v4226_v54 = vshll.u32 %v5379_v37, 16  ;;  %v6285_v61 = vld [vmem:[%s6632_s12 + $0x9c] sm:$0xff]  }
  0xf9   : > { %v4157_v0 = vor.u32 %v4156_v57, %v4153_v56  ;;  %v4191_v21 = vor.u32 %v4190_v24, %v7274_v23  ;;  %v4196_v56 = vrot.slane %v4194_v36, 5  ;;  %v4232_v57 = vshll.u32 %v5380_v44, 16 }
  0xfa   : > { %v4218_v1 = vshll.u32 %v5378_v43, 16  ;;  %v4205_v58 = vor.u32 %v4204_v47, %v4201_v40  ;;  %v4225_v9 = vrot.slane %v4223_v53, 4  ;;  %v4228_v11 = vrot.slane %v4226_v54, 5 }
  0xfb   : > { %v4158_v34 = vrot.slane %v4157_v0, 4  ;;  %v4192_v7 = vrot.slane %v4191_v21, 4  ;;  %v7316_v0 = vrot.slane %v4232_v57, 5  ;;  %v4252_v24 = vrot.slane %v4250_v62, 5 }
  0xfc   : > { %5861 = vmatmul.mubr.msk.bf16.vlgmr.msra.gmra.mrb[0].mxu0 %vm468_vm2, %v5395_v8  ;;  %v5398_v8 = vcombine.low %v4067_v6, %v4077_v45  ;;  %v4139_v6 = vsel %vm6654_vm5, %v4134_v26, %v7252_v52  ;;  %v4149_v45 = vsel %vm6654_vm5, %v4144_v28, %v4148_v20  ;;  %v4206_v23 = vrot.slane %v4205_v58, 4 }
  0xfd   : > { %5864 = vmatprep.mubr.msk.bf16.mxu0 %vm468_vm2, %v5396_v31  ;;  %v4208_v31 = vshll.u32 %v5377_v55, 16  ;;  %v4163_v52 = vsel %vm6654_vm5, %v4158_v34, %v7259_v12  ;;  %v5401_v12 = vcombine.low %v4139_v6, %v4149_v45  ;;  %v4197_v15 = vsel %vm6654_vm5, %v4192_v7, %v4196_v56  ;;  %v5388_v34 = vld [vmem:[%s6729_s18 + $0xb4] sm:$0xf]  ;;  %v6288_v45 = vld [vmem:[%s6607_s9 + $0x60] sm:$0xff]  }
  0xfe   : > { %5707 = vmatmul.mubr.msk.bf16.gmra.mrb[16].mxu1 %vm468_vm2, %v6281_v51  ;;  %v5383_v51 = vld [vmem:[%s6729_s18 + $0xa0] sm:$0xf]  ;;  %v5402_v55 = vcombine.low %v4163_v52, %v4173_v63  ;;  %v4229_v28 = vor.u32 %v4228_v11, %v4225_v9  ;;  %v5403_v29 = vcombine.low %v4187_v10, %v4197_v15  ;;  %v4266_v32 = vshll.u32 %v5384_v18, 16  ;;  %v6289_v10 = vld [vmem:[%s6607_s9 + $0x6c] sm:$0xff]   ;;  %v6290_v18 = vld [vmem:[%s6607_s9 + $0x78] sm:$0xff]  }
  0xff   : > { %5710 = vmatprep.mubr.msk.bf16.mxu1 %vm468_vm2, %v6282_v59  ;;  %v7296_v46 = vrot.slane %v4208_v31, 5  ;;  %v4236_v59 = vshrl.u32 %v5380_v44, 16  ;;  %v4256_v4 = vshll.u32 %v5383_v51, 16  ;;  %v4260_v5 = vshrl.u32 %v5383_v51, 16 }
 0x100   : > { %v4253_v31 = vor.u32 %v4252_v24, %v4249_v22  ;;  %v4274_v36 = vshll.u32 %v5385_v19, 16  ;;  %v4280_v37 = vshll.u32 %v5386_v2, 16  ;;  %v4230_v43 = vrot.slane %v4229_v28, 4 }
 0x101   : > { %v4238_v17 = vrot.slane %v4236_v59, 4  ;;  %v7319_v26 = vrot.slane %v4256_v4, 5  ;;  %v4262_v20 = vrot.slane %v4260_v5, 4  ;;  %v4211_v6 = vsel %vm6654_vm5, %v4206_v23, %v7296_v46  ;;  %v5391_v59 = vld [vmem:[%s6729_s18 + $0xc0] sm:$0xf] }
 0x102   : > { %v4295_v30 = vshrl.u32 %v5388_v34, 16  ;;  %v4298_v40 = vshll.u32 %v5388_v34, 16  ;;  %v4304_v47 = vshll.u32 %v5389_v35, 16  ;;  %v4308_v49 = vshrl.u32 %v5389_v35, 16  ;;  %v5392_v4 = vld [vmem:[%s6729_s18 + $0xc4] sm:$0xf] }
 0x103   : > { %v4263_v21 = vor.u32 %v4262_v20, %v7319_v26  ;;  %v4254_v53 = vrot.slane %v4253_v31, 4  ;;  %v4268_v54 = vrot.slane %v4266_v32, 5  ;;  %v4282_v7 = vrot.slane %v4280_v37, 5  ;;  %v5393_v32 = vld [vmem:[%s6729_s18 + $0xc8] sm:$0x1] }
 0x104   : > { %5865 = vmatmul.mubr.msk.bf16.gmra.mrb[4].mxu0 %vm468_vm2, %v5397_v41  ;;  %v5400_v41 = vcombine.low %v4115_v16, %v4125_v25  ;;  %v5381_v16 = vld [vmem:[%s6729_s18 + $0x98] sm:$0x1]  ;;  %v4220_v25 = vrot.slane %v4218_v1, 5  ;;  %v4297_v48 = vrot.slane %v4295_v30, 4  ;;  %v4300_v62 = vrot.slane %v4298_v40, 5  ;;  %v6291_v34 = vld [vmem:[%s6607_s9 + $0x84] sm:$0xff]  }
 0x105   : > { %5868 = vmatprep.mubr.msk.bf16.mxu0 %vm468_vm2, %v5398_v8  ;;  %v4215_v8 = vor.u32 %v4214_v39, %v7296_v46  ;;  %v4242_v3 = vshll.u32 %v5381_v16, 16  ;;  %v4264_v52 = vrot.slane %v4263_v21, 4  ;;  %v4276_v46 = vrot.slane %v4274_v36, 5  ;;  %v6293_v40 = vld [vmem:[%s6607_s9 + $0x9c] sm:$0xff]  }
 0x106   : > { %5711 = vmatmul.mubr.msk.bf16.gmra.mrb[20].mxu1 %vm468_vm2, %v6283_v13  ;;  %v4239_v13 = vor.u32 %v4238_v17, %v7316_v0  ;;  %v4306_v63 = vrot.slane %v4304_v47, 5  ;;  %v4310_v1 = vrot.slane %v4308_v49, 4  ;;  %v4235_v5 = vsel %vm6654_vm5, %v4230_v43, %v7316_v0 }
 0x107   : > { %5714 = vmatprep.mubr.msk.bf16.mxu1 %vm468_vm2, %v6284_v33  ;;  %v4216_v27 = vrot.slane %v4215_v8, 4  ;;  %v4271_v33 = vshrl.u32 %v5385_v19, 16  ;;  %v4244_v44 = vrot.slane %v4242_v3, 5  ;;  %v4290_v58 = vshll.u32 %v5387_v50, 16  ;;  %v5390_v8 = vld [vmem:[%s6729_s18 + $0xbc] sm:$0x1] }
 0x108   : > { %v4240_v39 = vrot.slane %v4239_v13, 4  ;;  %v4259_v9 = vsel %vm6654_vm5, %v4254_v53, %v7319_v26  ;;  %v4269_v11 = vsel %vm6654_vm5, %v4264_v52, %v4268_v54  ;;  %v4319_v15 = vshrl.u32 %v5391_v59, 16  ;;  %v6295_v54 = vld [vmem:[%s6607_s9 + $0xb4] sm:$0xff]  }
 0x109   : > { %v4221_v42 = vsel %vm6654_vm5, %v4216_v27, %v4220_v25  ;;  %v4273_v51 = vrot.slane %v4271_v33, 4  ;;  %v4322_v16 = vshll.u32 %v5391_v59, 16  ;;  %v4328_v0 = vshll.u32 %v5392_v4, 16 }
 0x10a   : > { %v5404_v57 = vcombine.low %v4211_v6, %v4221_v42  ;;  %v4332_v17 = vshrl.u32 %v5392_v4, 16  ;;  %v4301_v22 = vor.u32 %v4300_v62, %v4297_v48  ;;  %v4311_v24 = vor.u32 %v4310_v1, %v4306_v63 }
 0x10b   : > { %v5406_v20 = vcombine.low %v4259_v9, %v4269_v11  ;;  %v4292_v23 = vrot.slane %v4290_v58, 5  ;;  %v4321_v27 = vrot.slane %v4319_v15, 4  ;;  %v4324_v28 = vrot.slane %v4322_v16, 5 }
 0x10c   : > { %5869 = vmatmul.mubr.msk.bf16.gmra.mrb[8].mxu0 %vm468_vm2, %v5399_v38  ;;  %v4284_v38 = vshrl.u32 %v5386_v2, 16  ;;  %v4330_v3 = vrot.slane %v4328_v0, 5  ;;  %v4334_v2 = vrot.slane %v4332_v17, 4  ;;  %v4312_v13 = vrot.slane %v4311_v24, 4 }
 0x10d   : > { %5872 = vmatprep.mubr.msk.bf16.mxu0 %vm468_vm2, %v5400_v41  ;;  %v6287_v41 = vld [vmem:[%s6632_s12 + $0xb4] sm:$0xff]   ;;  %v4325_v21 = vor.u32 %v4324_v28, %v4321_v27  ;;  %v4338_v37 = vshll.u32 %v5393_v32, 16  ;;  %s287_s12 = sand.u32 1, %s6478_s22  }
 0x10e   : > { %5715 = vmatmul.mubr.msk.bf16.gmra.mrb[24].mxu1 %vm468_vm2, %v6285_v61  ;;  %v4286_v56 = vrot.slane %v4284_v38, 4  ;;  %v4245_v61 = vsel %vm6654_vm5, %v4240_v39, %v4244_v44  ;;  %v4335_v36 = vor.u32 %v4334_v2, %v4330_v3  ;;  %v6292_v38 = vld [vmem:[%s6607_s9 + $0x90] sm:$0xff]   ;;  %v6294_v39 = vld [vmem:[%s6607_s9 + $0xa8] sm:$0xff]   ;;  %s5014_s15 = sshll.u32 %s287_s12, 8  ;;  %s7616_s25 = scalar_lea.sflag [#allocation3], %s287_s12 }
 0x10f   : > { %5718 = vmatprep.mubr.msk.bf16.mxu1 %vm468_vm2, %v6286_v14  ;;  %v5405_v25 = vcombine.low %v4235_v5, %v4245_v61  ;;  %v4326_v44 = vrot.slane %v4325_v21, 4  ;;  %v4340_v30 = vrot.slane %v4338_v37, 5  ;;  %s7477_s16 = scalar_lea.vmem [#allocation2], %s5014_s15 }
 0x110   : > { %v4287_v14 = vor.u32 %v4286_v56, %v4282_v7  ;;  %s4912_s18 = sshll.u32 %s7477_s16, 4  ;;  %s7609_s18 = int_to_ptr.vmem [resolvable:$true] %s4912_s18 }
 0x111   : > { %v4331_v47 = vsel %vm6654_vm5, %v4326_v44, %v4330_v3  ;;  %s6424_s28 = scalar_lea.vmem %s7609_s18, 4096  ;;  %p6431_p0 = scmp.lt.s32.totalorder %s7609_s18, %s6429_s10 }
 0x112   : > { %v4288_v19 = vrot.slane %v4287_v14, 4  ;;  %p6425_p11 = scmp.ne.s32.totalorder %s7609_s18, %s6424_s28  ;;  %p6432_p1 = scmp.lt.s32.totalorder %s6430_s11, %s6424_s28 }
 0x114   : > { %5873 = vmatmul.mubr.msk.bf16.gmra.mrb[12].mxu0 %vm468_vm2, %v5401_v12  ;;  %v4277_v12 = vor.u32 %v4276_v46, %v4273_v51  ;;  %v4293_v35 = vsel %vm6654_vm5, %v4288_v19, %v4292_v23  ;;  %p6426_p12 = pnand %p6425_p11, %p6565_p5  ;;  %p6433_p2 = por %p6432_p1, %p6431_p0 }
 0x115   : > { %5876 = vmatprep.mubr.msk.bf16.mxu0 %vm468_vm2, %v5402_v55  ;;  %v4314_v55 = vshll.u32 %v5390_v8, 16  ;;  %v7401_v8 = vld [vmem:[%s7662_s5] ss:$0 sm:$0xff] }
 0x116   : > { %5719 = vmatmul.mubr.msk.bf16.gmra.mrb[28].mxu1 %vm468_vm2, %v6287_v41  ;;  %v4278_v26 = vrot.slane %v4277_v12, 4  ;;  %p6427_p13 = pneg %p6426_p12 }
 0x117   : > { %5740 = vmatprep.mubr.msk.bf16.mxu1 %vm468_vm2, %v6288_v45  ;;  %v4316_v31 = vrot.slane %v4314_v55, 5  ;;  %v4336_v45 = vrot.slane %v4335_v36, 4 }
 0x118   : > { %v4283_v33 = vsel %vm6654_vm5, %v4278_v26, %v4282_v7  ;;  %p6434_p3 = pnand %p6433_p2, %p6427_p13 }
 0x119   : > { %v4317_v6 = vsel %vm6654_vm5, %v4312_v13, %v4316_v31  ;;  %v5407_v42 = vcombine.low %v4283_v33, %v4293_v35  ;;  %v4341_v49 = vsel %vm6654_vm5, %v4336_v45, %v4340_v30 }
 0x11a   : > { %v5409_v53 = vcombine.low %v4331_v47, %v4341_v49 }
 0x11c   : > { %5877 = vmatmul.mubr.msk.bf16.gmra.mrb[16].mxu0 %vm468_vm2, %v5403_v29  ;;  %v4302_v29 = vrot.slane %v4301_v22, 4 }
 0x11d   : > { %5880 = vmatprep.mubr.msk.bf16.mxu0 %vm468_vm2, %v5404_v57 }
 0x11e   : > { %5741 = vmatmul.mubr.msk.bf16.vlgmr.msra.gmra.mrb[16].mxu1 %vm468_vm2, %v6289_v10  ;;  %v4307_v41 = vsel %vm6654_vm5, %v4302_v29, %v4306_v63 }
 0x11f   : > { %5744 = vmatprep.mubr.msk.bf16.mxu1 %vm468_vm2, %v6290_v18  ;;  %v5408_v43 = vcombine.low %v4307_v41, %v4317_v6 }
 0x124   : > { %5881 = vmatmul.mubr.msk.bf16.gmra.mrb[20].mxu0 %vm468_vm2, %v5405_v25 }
 0x125   : > { %5884 = vmatprep.mubr.msk.bf16.mxu0 %vm468_vm2, %v5406_v20 }
 0x126   : > { %5745 = vmatmul.mubr.msk.bf16.gmra.mrb[20].mxu1 %vm468_vm2, %v6291_v34 }
 0x127   : > { %5748 = vmatprep.mubr.msk.bf16.mxu1 %vm468_vm2, %v6292_v38 }
 0x12c   : > { %5885 = vmatmul.mubr.msk.bf16.gmra.mrb[24].mxu0 %vm468_vm2, %v5407_v42 }
 0x12d   : > { %5888 = vmatprep.mubr.msk.bf16.mxu0 %vm468_vm2, %v5408_v43 }
 0x12e   : > { %5749 = vmatmul.mubr.msk.bf16.gmra.mrb[24].mxu1 %vm468_vm2, %v6293_v40 }
 0x12f   : > { %5752 = vmatprep.mubr.msk.bf16.mxu1 %vm468_vm2, %v6294_v39 }
 0x134   : > { %5889 = vmatmul.mubr.msk.bf16.gmra.mrb[28].mxu0 %vm468_vm2, %v5409_v53 }
 0x136   : > { %5753 = vmatmul.mubr.msk.bf16.gmra.mrb[28].mxu1 %vm468_vm2, %v6295_v54 }
 0x1b1   : > { %v5692_v51 = vpop.f32.mrb[0].mxu1 }
 0x1b2   : > { %v1920_v52 = vpop.f32.mrb[1].mxu1 }
 0x1b3   : > { %v5693_v50 = vpop.f32.mrb[2].mxu1 }
 0x1b4   : > { %v1923_v46 = vpop.f32.mrb[3].mxu1 }
 0x1b9   : > { %v5696_v7 = vpop.f32.mrb[4].mxu1 }
 0x1ba   : > { %v1936_v56 = vpop.f32.mrb[5].mxu1 }
 0x1bb   : > { %v5697_v57 = vpop.f32.mrb[6].mxu1 }
 0x1bc   : > { %v1939_v60 = vpop.f32.mrb[7].mxu1 }
 0x1c1   : > { %v5700_v59 = vpop.f32.mrb[8].mxu1 }
 0x1c2   : > { %v1952_v48 = vpop.f32.mrb[9].mxu1 }
 0x1c3   : > { %v5701_v62 = vpop.f32.mrb[10].mxu1 }
 0x1c4   : > { %v7388_v63 = vpop.f32.mrb[11].mxu1 }
 0x1c9   : > { %v7390_v1 = vpop.f32.mrb[12].mxu1 }
 0x1ca   : > { %v7392_v4 = vpop.f32.mrb[13].mxu1 }
 0x1cb   : > { %v7394_v5 = vpop.f32.mrb[14].mxu1 }
 0x1cc   : > { %v7396_v61 = vpop.f32.mrb[15].mxu1 }
 0x1cf   : > { %v5862_v58 = vpop.f32.mrb[0].mxu0 }
 0x1d0   : > { %v5894_v9 = vadd.f32 %v5862_v58, %v5692_v51  ;;  %v4476_v11 = vpop.f32.mrb[1].mxu0 }
 0x1d1   : > { %v5895_v12 = vadd.f32 %v4476_v11, %v1920_v52  ;;  %v5863_v14 = vpop.f32.mrb[2].mxu0 }
 0x1d2   : > { %v7404_v10 = vadd.f32 %v5894_v9, %v7401_v8  ;;  %v5896_v15 = vadd.f32 %v5863_v14, %v5693_v50  ;;  %v4479_v16 = vpop.f32.mrb[3].mxu0 }
 0x1d3   : > { %v7407_v0 = vadd.f32 %v5895_v12, %v7401_v8  ;;  %v5897_v17 = vadd.f32 %v4479_v16, %v1923_v46 }
 0x1d4   : > { %v4676_v18 = vsub.f32 0.0, %v7404_v10  ;;  %v7411_v22 = vadd.f32 %v5896_v15, %v7401_v8 }
 0x1d5   : > { %v4674_v24 = vsub.f32 0.0, %v7407_v0  ;;  %v7415_v55 = vadd.f32 %v5897_v17, %v7401_v8 }
 0x1d6   : > { %v4710_v25 = vmul.f32 1.442695, %v4676_v18  ;;  %v4677_v20 = vsub.f32 0.0, %v7411_v22 }
 0x1d7   : > { %v4706_v26 = vmul.f32 1.442695, %v4674_v24  ;;  %v4675_v19 = vsub.f32 0.0, %v7415_v55  ;;  %v5866_v23 = vpop.f32.mrb[4].mxu0 }
 0x1d8   : > { %6296 = vpow2.f32 %v4710_v25  ;;  %v4712_v27 = vmul.f32 1.442695, %v4677_v20  ;;  %v5898_v28 = vadd.f32 %v5866_v23, %v5696_v7  ;;  %v4492_v3 = vpop.f32.mrb[5].mxu0 }
 0x1d9   : > { %6298 = vpow2.f32 %v4706_v26  ;;  %v4708_v2 = vmul.f32 1.442695, %v4675_v19  ;;  %v5899_v29 = vadd.f32 %v4492_v3, %v1936_v56  ;;  %v5867_v13 = vpop.f32.mrb[6].mxu0 }
 0x1da   : > { %6300 = vpow2.f32 %v4712_v27  ;;  %v7420_v31 = vadd.f32 %v5898_v28, %v7401_v8  ;;  %v5900_v32 = vadd.f32 %v5867_v13, %v5697_v57  ;;  %v4495_v33 = vpop.f32.mrb[7].mxu0 }
 0x1db   : > { %6302 = vpow2.f32 %v4708_v2  ;;  %v7423_v34 = vadd.f32 %v5899_v29, %v7401_v8  ;;  %v5901_v35 = vadd.f32 %v4495_v33, %v1939_v60 }
 0x1dc   : > { %v4680_v21 = vsub.f32 0.0, %v7420_v31  ;;  %v7427_v36 = vadd.f32 %v5900_v32, %v7401_v8 }
 0x1dd   : > { %v4678_v37 = vsub.f32 0.0, %v7423_v34  ;;  %v7431_v38 = vadd.f32 %v5901_v35, %v7401_v8 }
 0x1de   : > { %v4718_v41 = vmul.f32 1.442695, %v4680_v21  ;;  %v4681_v6 = vsub.f32 0.0, %v7427_v36 }
 0x1df   : > { %v4714_v42 = vmul.f32 1.442695, %v4678_v37  ;;  %v4679_v43 = vsub.f32 0.0, %v7431_v38  ;;  %v5870_v44 = vpop.f32.mrb[8].mxu0 }
 0x1e0   : > { %6304 = vpow2.f32 %v4718_v41  ;;  %v4720_v45 = vmul.f32 1.442695, %v4681_v6  ;;  %v5902_v30 = vadd.f32 %v5870_v44, %v5700_v59  ;;  %v4508_v40 = vpop.f32.mrb[9].mxu0 }
 0x1e1   : > { %6306 = vpow2.f32 %v4714_v42  ;;  %v4716_v47 = vmul.f32 1.442695, %v4679_v43  ;;  %v5903_v49 = vadd.f32 %v4508_v40, %v1952_v48  ;;  %v5871_v39 = vpop.f32.mrb[10].mxu0 }
 0x1e2   : > { %v6297_v53 = vpop.eup %6296  ;;  %6308 = vpow2.f32 %v4720_v45  ;;  %v7436_v54 = vadd.f32 %v5902_v30, %v7401_v8  ;;  %v5904_v51 = vadd.f32 %v5871_v39, %v5701_v62  ;;  %v4511_v52 = vpop.f32.mrb[11].mxu0 }
 0x1e3   : > { %v6299_v50 = vpop.eup %6298  ;;  %v4772_v46 = vadd.f32 1.0, %v6297_v53  ;;  %6310 = vpow2.f32 %v4716_v47  ;;  %v7439_v7 = vadd.f32 %v5903_v49, %v7401_v8  ;;  %v5905_v56 = vadd.f32 %v4511_v52, %v7388_v63 }
 0x1e4   : > { %v6301_v57 = vpop.eup %6300  ;;  %v4770_v60 = vadd.f32 1.0, %v6299_v50  ;;  %v4684_v59 = vsub.f32 0.0, %v7436_v54  ;;  %v7444_v48 = vadd.f32 %v5904_v51, %v7401_v8 }
 0x1e5   : > { %v6303_v58 = vpop.eup %6302  ;;  %6312 = vrcp.f32 %v4772_v46  ;;  %v4773_v62 = vadd.f32 1.0, %v6301_v57  ;;  %v4682_v9 = vsub.f32 0.0, %v7439_v7  ;;  %v7448_v11 = vadd.f32 %v5905_v56, %v7401_v8 }
 0x1e6   : > { %6314 = vrcp.f32 %v4770_v60  ;;  %v4771_v12 = vadd.f32 1.0, %v6303_v58  ;;  %v4726_v14 = vmul.f32 1.442695, %v4684_v59  ;;  %v4685_v63 = vsub.f32 0.0, %v7444_v48 }
 0x1e7   : > { %6316 = vrcp.f32 %v4773_v62  ;;  %v4722_v15 = vmul.f32 1.442695, %v4682_v9  ;;  %v4683_v16 = vsub.f32 0.0, %v7448_v11  ;;  %v5874_v17 = vpop.f32.mrb[12].mxu0 }
 0x1e8   : > { %6318 = vrcp.f32 %v4771_v12  ;;  %v4728_v18 = vmul.f32 1.442695, %v4685_v63  ;;  %v5906_v24 = vadd.f32 %v5874_v17, %v7390_v1  ;;  %v4524_v25 = vpop.f32.mrb[13].mxu0 }
 0x1e9   : > { %6320 = vpow2.f32 %v4726_v14  ;;  %v4724_v20 = vmul.f32 1.442695, %v4683_v16  ;;  %v5907_v26 = vadd.f32 %v4524_v25, %v7392_v4  ;;  %v5875_v19 = vpop.f32.mrb[14].mxu0 }
 0x1ea   : > { %v6305_v23 = vpop.eup %6304  ;;  %6322 = vpow2.f32 %v4722_v15  ;;  %v7456_v27 = vadd.f32 %v5906_v24, %v7401_v8  ;;  %v5908_v28 = vadd.f32 %v5875_v19, %v7394_v5  ;;  %v4527_v3 = vpop.f32.mrb[15].mxu0 }
 0x1eb   : > { %v6307_v2 = vpop.eup %6306  ;;  %v4776_v29 = vadd.f32 1.0, %v6305_v23  ;;  %6324 = vpow2.f32 %v4728_v18  ;;  %v7460_v1 = vadd.f32 %v5907_v26, %v7401_v8  ;;  %v5909_v13 = vadd.f32 %v4527_v3, %v7396_v61 }
 0x1ec   : > { %v6309_v32 = vpop.eup %6308  ;;  %v4774_v4 = vadd.f32 1.0, %v6307_v2  ;;  %6326 = vpow2.f32 %v4724_v20  ;;  %v4688_v33 = vsub.f32 0.0, %v7456_v27  ;;  %v7467_v35 = vadd.f32 %v5908_v28, %v7401_v8 }
 0x1ed   : > { %v6311_v5 = vpop.eup %6310  ;;  %6328 = vrcp.f32 %v4776_v29  ;;  %v4777_v21 = vadd.f32 1.0, %v6309_v32  ;;  %v4686_v37 = vsub.f32 0.0, %v7460_v1  ;;  %v7471_v41 = vadd.f32 %v5909_v13, %v7401_v8 }
 0x1ee   : > { %6330 = vrcp.f32 %v4774_v4  ;;  %v4775_v61 = vadd.f32 1.0, %v6311_v5  ;;  %v4734_v6 = vmul.f32 1.442695, %v4688_v33  ;;  %v4689_v42 = vsub.f32 0.0, %v7467_v35 }
 0x1ef   : > { %v6313_v43 = vpop.eup %6312  ;;  %6332 = vrcp.f32 %v4777_v21  ;;  %v4730_v44 = vmul.f32 1.442695, %v4686_v37  ;;  %v4687_v45 = vsub.f32 0.0, %v7471_v41  ;;  %v5878_v30 = vpop.f32.mrb[16].mxu0 }
 0x1f0   : > { %v6315_v40 = vpop.eup %6314  ;;  %v4836_v47 = vmul.f32 %v6313_v43, %v7404_v10  ;;  %6334 = vrcp.f32 %v4775_v61  ;;  %v4736_v49 = vmul.f32 1.442695, %v4689_v42  ;;  %v4540_v39 = vpop.f32.mrb[17].mxu0 }
 0x1f1   : > { %v6317_v53 = vpop.eup %6316  ;;  %v4834_v51 = vmul.f32 %v6315_v40, %v7407_v0  ;;  %6336 = vpow2.f32 %v4734_v6  ;;  %v4732_v52 = vmul.f32 1.442695, %v4687_v45  ;;  %v5879_v50 = vpop.f32.mrb[18].mxu0 }
 0x1f2   : > { %v6319_v46 = vpop.eup %6318  ;;  %4868 = vst [vmem:[%s7477_s16 + $0x10] sm:$0xff] %v4836_v47  ;;  %v4837_v56 = vmul.f32 %v6317_v53, %v7411_v22  ;;  %6338 = vpow2.f32 %v4730_v44  ;;  %v4543_v10 = vpop.f32.mrb[19].mxu0 }
 0x1f3   : > { %v6321_v57 = vpop.eup %6320  ;;  %4866 = vst [vmem:[%s7477_s16] sm:$0xff] %v4834_v51  ;;  %v4835_v60 = vmul.f32 %v6319_v46, %v7415_v55  ;;  %6340 = vpow2.f32 %v4736_v49  ;;  %v5742_v58 = vpop.f32.mrb[16].mxu1 }
 0x1f4   : > { %v6323_v0 = vpop.eup %6322  ;;  %4869 = vst [vmem:[%s7477_s16 + $0x18] sm:$0xff] %v4837_v56  ;;  %v4780_v59 = vadd.f32 1.0, %v6321_v57  ;;  %6342 = vpow2.f32 %v4732_v52  ;;  %v5910_v12 = vadd.f32 %v5878_v30, %v5742_v58  ;;  %v2345_v14 = vpop.f32.mrb[17].mxu1 }
 0x1f5   : > { %v6325_v62 = vpop.eup %6324  ;;  %4867 = vst [vmem:[%s7477_s16 + $0x8] sm:$0xff] %v4835_v60  ;;  %v4778_v9 = vadd.f32 1.0, %v6323_v0  ;;  %v5911_v15 = vadd.f32 %v4540_v39, %v2345_v14  ;;  %v5743_v16 = vpop.f32.mrb[18].mxu1 }
 0x1f6   : > { %v6327_v63 = vpop.eup %6326  ;;  %6344 = vrcp.f32 %v4780_v59  ;;  %v4781_v22 = vadd.f32 1.0, %v6325_v62  ;;  %v7486_v55 = vadd.f32 %v5910_v12, %v7401_v8  ;;  %v5912_v24 = vadd.f32 %v5879_v50, %v5743_v16  ;;  %v2348_v25 = vpop.f32.mrb[19].mxu1 }
 0x1f7   : > { %v6329_v17 = vpop.eup %6328  ;;  %6346 = vrcp.f32 %v4778_v9  ;;  %v4779_v18 = vadd.f32 1.0, %v6327_v63  ;;  %v5882_v20 = vpop.f32.mrb[20].mxu0  ;;  %v7490_v23 = vadd.f32 %v5911_v15, %v7401_v8  ;;  %v5913_v28 = vadd.f32 %v4543_v10, %v2348_v25 }
 0x1f8   : > { %v6331_v26 = vpop.eup %6330  ;;  %v4840_v19 = vmul.f32 %v6329_v17, %v7420_v31  ;;  %6348 = vrcp.f32 %v4781_v22  ;;  %v4556_v3 = vpop.f32.mrb[21].mxu0  ;;  %v4692_v13 = vsub.f32 0.0, %v7486_v55  ;;  %v7495_v32 = vadd.f32 %v5912_v24, %v7401_v8 }
 0x1f9   : > { %v6333_v2 = vpop.eup %6332  ;;  %v4838_v29 = vmul.f32 %v6331_v26, %v7423_v34  ;;  %6350 = vrcp.f32 %v4779_v18  ;;  %v5883_v4 = vpop.f32.mrb[22].mxu0  ;;  %v4690_v5 = vsub.f32 0.0, %v7490_v23  ;;  %v7501_v21 = vadd.f32 %v5913_v28, %v7401_v8 }
 0x1fa   : > { %v6335_v33 = vpop.eup %6334  ;;  %4872 = vst [vmem:[%s7477_s16 + $0x30] sm:$0xff] %v4840_v19  ;;  %v4841_v31 = vmul.f32 %v6333_v2, %v7427_v36  ;;  %v4559_v37 = vpop.f32.mrb[23].mxu0  ;;  %v4742_v6 = vmul.f32 1.442695, %v4692_v13  ;;  %v4693_v42 = vsub.f32 0.0, %v7495_v32 }
 0x1fb   : > { %v6337_v34 = vpop.eup %6336  ;;  %4870 = vst [vmem:[%s7477_s16 + $0x20] sm:$0xff] %v4838_v29  ;;  %v4839_v61 = vmul.f32 %v6335_v33, %v7431_v38  ;;  %v4691_v45 = vsub.f32 0.0, %v7501_v21  ;;  %v5746_v30 = vpop.f32.mrb[20].mxu1  ;;  %v4738_v47 = vmul.f32 1.442695, %v4690_v5 }
 0x1fc   : > { %v6339_v43 = vpop.eup %6338  ;;  %4873 = vst [vmem:[%s7477_s16 + $0x38] sm:$0xff] %v4841_v31  ;;  %v4784_v44 = vadd.f32 1.0, %v6337_v34  ;;  %6352 = vpow2.f32 %v4742_v6  ;;  %v5914_v49 = vadd.f32 %v5882_v20, %v5746_v30  ;;  %v2361_v39 = vpop.f32.mrb[21].mxu1  ;;  %v4744_v38 = vmul.f32 1.442695, %v4693_v42 }
 0x1fd   : > { %v6341_v36 = vpop.eup %6340  ;;  %4871 = vst [vmem:[%s7477_s16 + $0x28] sm:$0xff] %v4839_v61  ;;  %v4782_v40 = vadd.f32 1.0, %v6339_v43  ;;  %v5915_v52 = vadd.f32 %v4556_v3, %v2361_v39  ;;  %v5747_v50 = vpop.f32.mrb[22].mxu1  ;;  %v4740_v59 = vmul.f32 1.442695, %v4691_v45 }
 0x1fe   : > { %v6343_v53 = vpop.eup %6342  ;;  %6354 = vrcp.f32 %v4784_v44  ;;  %v4785_v51 = vadd.f32 1.0, %v6341_v36  ;;  %v7510_v56 = vadd.f32 %v5914_v49, %v7401_v8  ;;  %v5916_v10 = vadd.f32 %v5883_v4, %v5747_v50  ;;  %v2364_v57 = vpop.f32.mrb[23].mxu1 }
 0x1ff   : > { %6356 = vrcp.f32 %v4782_v40  ;;  %v4783_v46 = vadd.f32 1.0, %v6343_v53  ;;  %v5886_v60 = vpop.f32.mrb[24].mxu0  ;;  %v7513_v58 = vadd.f32 %v5915_v52, %v7401_v8  ;;  %v5917_v62 = vadd.f32 %v4559_v37, %v2364_v57 }
 0x200   : > { %v6345_v0 = vpop.eup %6344  ;;  %6358 = vrcp.f32 %v4785_v51  ;;  %v4572_v9 = vpop.f32.mrb[25].mxu0  ;;  %v4696_v63 = vsub.f32 0.0, %v7510_v56  ;;  %v7518_v22 = vadd.f32 %v5916_v10, %v7401_v8 }
 0x201   : > { %v6347_v12 = vpop.eup %6346  ;;  %v4844_v14 = vmul.f32 %v6345_v0, %v7436_v54  ;;  %6360 = vrcp.f32 %v4783_v46  ;;  %v5887_v15 = vpop.f32.mrb[26].mxu0  ;;  %v4694_v18 = vsub.f32 0.0, %v7513_v58  ;;  %v7523_v24 = vadd.f32 %v5917_v62, %v7401_v8 }
 0x202   : > { %v6349_v16 = vpop.eup %6348  ;;  %v4842_v17 = vmul.f32 %v6347_v12, %v7439_v7  ;;  %6362 = vpow2.f32 %v4738_v47  ;;  %v4575_v25 = vpop.f32.mrb[27].mxu0  ;;  %v4750_v26 = vmul.f32 1.442695, %v4696_v63  ;;  %v4697_v19 = vsub.f32 0.0, %v7518_v22 }
 0x203   : > { %v6351_v54 = vpop.eup %6350  ;;  %4876 = vst [vmem:[%s7477_s16 + $0x50] sm:$0xff] %v4844_v14  ;;  %v4845_v20 = vmul.f32 %v6349_v16, %v7444_v48  ;;  %6364 = vpow2.f32 %v4744_v38  ;;  %v4746_v28 = vmul.f32 1.442695, %v4694_v18  ;;  %v4695_v3 = vsub.f32 0.0, %v7523_v24  ;;  %v5750_v2 = vpop.f32.mrb[24].mxu1 }
 0x204   : > { %4874 = vst [vmem:[%s7477_s16 + $0x40] sm:$0xff] %v4842_v17  ;;  %v4843_v7 = vmul.f32 %v6351_v54, %v7448_v11  ;;  %6366 = vpow2.f32 %v4740_v59  ;;  %v4752_v29 = vmul.f32 1.442695, %v4697_v19  ;;  %v5918_v13 = vadd.f32 %v5886_v60, %v5750_v2  ;;  %v2377_v4 = vpop.f32.mrb[25].mxu1 }
 0x205   : > { %4877 = vst [vmem:[%s7477_s16 + $0x58] sm:$0xff] %v4845_v20  ;;  %6368 = vpow2.f32 %v4750_v26  ;;  %v4748_v48 = vmul.f32 1.442695, %v4695_v3  ;;  %v5919_v33 = vadd.f32 %v4572_v9, %v2377_v4  ;;  %v5751_v31 = vpop.f32.mrb[26].mxu1 }
 0x206   : > { %4875 = vst [vmem:[%s7477_s16 + $0x48] sm:$0xff] %v4843_v7  ;;  %6370 = vpow2.f32 %v4746_v28  ;;  %v6353_v5 = vpop.eup %6352  ;;  %v7534_v37 = vadd.f32 %v5918_v13, %v7401_v8  ;;  %v5920_v11 = vadd.f32 %v5887_v15, %v5751_v31  ;;  %v2380_v34 = vpop.f32.mrb[27].mxu1 }
 0x207   : > { %6372 = vpow2.f32 %v4752_v29  ;;  %v5890_v61 = vpop.f32.mrb[28].mxu0  ;;  %v4788_v42 = vadd.f32 1.0, %v6353_v5  ;;  %v7537_v43 = vadd.f32 %v5919_v33, %v7401_v8  ;;  %v5921_v44 = vadd.f32 %v4575_v25, %v2380_v34 }
 0x208   : > { %v6355_v6 = vpop.eup %6354  ;;  %6374 = vpow2.f32 %v4748_v48  ;;  %v4588_v45 = vpop.f32.mrb[29].mxu0  ;;  %v4700_v40 = vsub.f32 0.0, %v7534_v37  ;;  %v7542_v47 = vadd.f32 %v5920_v11, %v7401_v8 }
 0x209   : > { %v6357_v30 = vpop.eup %6356  ;;  %v4848_v36 = vmul.f32 %v6355_v6, %v7456_v27  ;;  %v5891_v49 = vpop.f32.mrb[30].mxu0  ;;  %6376 = vrcp.f32 %v4788_v42  ;;  %v4698_v51 = vsub.f32 0.0, %v7537_v43  ;;  %v7547_v38 = vadd.f32 %v5921_v44, %v7401_v8 }
 0x20a   : > { %v6359_v39 = vpop.eup %6358  ;;  %v4846_v53 = vmul.f32 %v6357_v30, %v7460_v1  ;;  %v4591_v52 = vpop.f32.mrb[31].mxu0  ;;  %v4758_v46 = vmul.f32 1.442695, %v4700_v40  ;;  %v4701_v10 = vsub.f32 0.0, %v7542_v47 }
 0x20b   : > { %v6361_v50 = vpop.eup %6360  ;;  %4880 = vst [vmem:[%s7477_s16 + $0x70] sm:$0xff] %v4848_v36  ;;  %v4849_v27 = vmul.f32 %v6359_v39, %v7467_v35  ;;  %v4754_v60 = vmul.f32 1.442695, %v4698_v51  ;;  %v5754_v0 = vpop.f32.mrb[28].mxu1  ;;  %v4699_v9 = vsub.f32 0.0, %v7547_v38 }
 0x20c   : > { %v6363_v57 = vpop.eup %6362  ;;  %4878 = vst [vmem:[%s7477_s16 + $0x60] sm:$0xff] %v4846_v53  ;;  %v4847_v1 = vmul.f32 %v6361_v50, %v7471_v41  ;;  %6378 = vpow2.f32 %v4758_v46  ;;  %v5922_v12 = vadd.f32 %v5890_v61, %v5754_v0  ;;  %v2393_v14 = vpop.f32.mrb[29].mxu1  ;;  %v4760_v15 = vmul.f32 1.442695, %v4701_v10 }
 0x20d   : > { %v6365_v59 = vpop.eup %6364  ;;  %4881 = vst [vmem:[%s7477_s16 + $0x78] sm:$0xff] %v4849_v27  ;;  %v4786_v62 = vadd.f32 1.0, %v6363_v57  ;;  %6380 = vpow2.f32 %v4754_v60  ;;  %v5923_v16 = vadd.f32 %v4588_v45, %v2393_v14  ;;  %v5755_v17 = vpop.f32.mrb[30].mxu1  ;;  %v4756_v11 = vmul.f32 1.442695, %v4699_v9 }
 0x20e   : > { %v6367_v63 = vpop.eup %6366  ;;  %4879 = vst [vmem:[%s7477_s16 + $0x68] sm:$0xff] %v4847_v1  ;;  %v4789_v35 = vadd.f32 1.0, %v6365_v59  ;;  %v7558_v25 = vadd.f32 %v5922_v12, %v7401_v8  ;;  %v5924_v54 = vadd.f32 %v5891_v49, %v5755_v17  ;;  %v2396_v20 = vpop.f32.mrb[31].mxu1 }
 0x20f   : > { %v6369_v18 = vpop.eup %6368  ;;  %6382 = vrcp.f32 %v4786_v62  ;;  %v4787_v41 = vadd.f32 1.0, %v6367_v63  ;;  %v7561_v7 = vadd.f32 %v5923_v16, %v7401_v8  ;;  %v5925_v28 = vadd.f32 %v4591_v52, %v2396_v20 }
 0x210   : > { %v6371_v26 = vpop.eup %6370  ;;  %6384 = vrcp.f32 %v4789_v35  ;;  %v4792_v19 = vadd.f32 1.0, %v6369_v18  ;;  %v4704_v29 = vsub.f32 0.0, %v7558_v25  ;;  %v7565_v13 = vadd.f32 %v5924_v54, %v7401_v8 }
 0x211   : > { %v6373_v3 = vpop.eup %6372  ;;  %6386 = vrcp.f32 %v4787_v41  ;;  %v4790_v2 = vadd.f32 1.0, %v6371_v26  ;;  %v4702_v33 = vsub.f32 0.0, %v7561_v7  ;;  %v7569_v31 = vadd.f32 %v5925_v28, %v7401_v8 }
 0x212   : > { %v6375_v4 = vpop.eup %6374  ;;  %6388 = vrcp.f32 %v4792_v19  ;;  %v4793_v48 = vadd.f32 1.0, %v6373_v3  ;;  %v4766_v61 = vmul.f32 1.442695, %v4704_v29  ;;  %v4705_v6 = vsub.f32 0.0, %v7565_v13 }
 0x213   : > { %6390 = vrcp.f32 %v4790_v2  ;;  %v4791_v5 = vadd.f32 1.0, %v6375_v4  ;;  %v6377_v34 = vpop.eup %6376  ;;  %v4762_v44 = vmul.f32 1.442695, %v4702_v33  ;;  %v4703_v45 = vsub.f32 0.0, %v7569_v31 }
 0x214   : > { %6392 = vrcp.f32 %v4793_v48  ;;  %v4852_v42 = vmul.f32 %v6377_v34, %v7486_v55  ;;  %v4768_v40 = vmul.f32 1.442695, %v4705_v6 }
 0x215   : > { %6394 = vrcp.f32 %v4791_v5  ;;  %v4764_v53 = vmul.f32 1.442695, %v4703_v45 }
 0x216   : > { %6396 = vpow2.f32 %v4760_v15  ;;  %v6379_v30 = vpop.eup %6378  ;;  %4884 = vst [vmem:[%s7477_s16 + $0x90] sm:$0xff] %v4852_v42 }
 0x217   : > { %6398 = vpow2.f32 %v4756_v11  ;;  %v6381_v8 = vpop.eup %6380  ;;  %v4796_v36 = vadd.f32 1.0, %v6379_v30 }
 0x218   : > { %6400 = vpow2.f32 %v4766_v61  ;;  %v4794_v39 = vadd.f32 1.0, %v6381_v8 }
 0x219   : > { %v6383_v49 = vpop.eup %6382  ;;  %6402 = vpow2.f32 %v4762_v44 }
 0x21a   : > { %v6385_v55 = vpop.eup %6384  ;;  %v4850_v51 = vmul.f32 %v6383_v49, %v7490_v23  ;;  %6404 = vrcp.f32 %v4796_v36 }
 0x21b   : > { %v6387_v52 = vpop.eup %6386  ;;  %v4853_v50 = vmul.f32 %v6385_v55, %v7495_v32  ;;  %6406 = vrcp.f32 %v4794_v39 }
 0x21c   : > { %v6389_v27 = vpop.eup %6388  ;;  %4882 = vst [vmem:[%s7477_s16 + $0x80] sm:$0xff] %v4850_v51  ;;  %v4851_v46 = vmul.f32 %v6387_v52, %v7501_v21  ;;  %6408 = vpow2.f32 %v4768_v40 }
 0x21d   : > { %v6391_v10 = vpop.eup %6390  ;;  %4885 = vst [vmem:[%s7477_s16 + $0x98] sm:$0xff] %v4853_v50  ;;  %v4856_v57 = vmul.f32 %v6389_v27, %v7510_v56  ;;  %6410 = vpow2.f32 %v4764_v53 }
 0x21e   : > { %v6393_v23 = vpop.eup %6392  ;;  %4883 = vst [vmem:[%s7477_s16 + $0x88] sm:$0xff] %v4851_v46  ;;  %v4854_v1 = vmul.f32 %v6391_v10, %v7513_v58 }
 0x21f   : > { %v6395_v60 = vpop.eup %6394  ;;  %4888 = vst [vmem:[%s7477_s16 + $0xb0] sm:$0xff] %v4856_v57  ;;  %v4857_v32 = vmul.f32 %v6393_v23, %v7518_v22 }
 0x220   : > { %v6397_v0 = vpop.eup %6396  ;;  %4886 = vst [vmem:[%s7477_s16 + $0xa0] sm:$0xff] %v4854_v1  ;;  %v4855_v21 = vmul.f32 %v6395_v60, %v7523_v24 }
 0x221   : > { %v6399_v59 = vpop.eup %6398  ;;  %4889 = vst [vmem:[%s7477_s16 + $0xb8] sm:$0xff] %v4857_v32  ;;  %v4797_v62 = vadd.f32 1.0, %v6397_v0 }
 0x222   : > { %v6401_v9 = vpop.eup %6400  ;;  %4887 = vst [vmem:[%s7477_s16 + $0xa8] sm:$0xff] %v4855_v21  ;;  %v4795_v56 = vadd.f32 1.0, %v6399_v59 }
 0x223   : > { %v6403_v12 = vpop.eup %6402  ;;  %6412 = vrcp.f32 %v4797_v62  ;;  %v4800_v14 = vadd.f32 1.0, %v6401_v9 }
 0x224   : > { %v6405_v58 = vpop.eup %6404  ;;  %6414 = vrcp.f32 %v4795_v56  ;;  %v4798_v63 = vadd.f32 1.0, %v6403_v12 }
 0x225   : > { %v6407_v35 = vpop.eup %6406  ;;  %v4860_v22 = vmul.f32 %v6405_v58, %v7534_v37  ;;  %6416 = vrcp.f32 %v4800_v14 }
 0x226   : > { %v6409_v15 = vpop.eup %6408  ;;  %v4858_v24 = vmul.f32 %v6407_v35, %v7537_v43  ;;  %6418 = vrcp.f32 %v4798_v63 }
 0x227   : > { %v6411_v16 = vpop.eup %6410  ;;  %4892 = vst [vmem:[%s7477_s16 + $0xd0] sm:$0xff] %v4860_v22  ;;  %v4801_v17 = vadd.f32 1.0, %v6409_v15 }
 0x228   : > { %4890 = vst [vmem:[%s7477_s16 + $0xc0] sm:$0xff] %v4858_v24  ;;  %v4799_v18 = vadd.f32 1.0, %v6411_v16 }
 0x229   : > { %6420 = vrcp.f32 %v4801_v17 }
 0x22a   : > { %6422 = vrcp.f32 %v4799_v18 }
 0x22d   : > { %v6413_v41 = vpop.eup %6412 }
 0x22e   : > { %v6415_v37 = vpop.eup %6414  ;;  %v4861_v54 = vmul.f32 %v6413_v41, %v7542_v47 }
 0x22f   : > { %v6417_v20 = vpop.eup %6416  ;;  %v4859_v43 = vmul.f32 %v6415_v37, %v7547_v38 }
 0x230   : > { %v6419_v26 = vpop.eup %6418  ;;  %4893 = vst [vmem:[%s7477_s16 + $0xd8] sm:$0xff] %v4861_v54  ;;  %v4864_v19 = vmul.f32 %v6417_v20, %v7558_v25 }
 0x231   : > { %4891 = vst [vmem:[%s7477_s16 + $0xc8] sm:$0xff] %v4859_v43  ;;  %v4862_v28 = vmul.f32 %v6419_v26, %v7561_v7 }
 0x232   : > { %4896 = vst [vmem:[%s7477_s16 + $0xf0] sm:$0xff] %v4864_v19 }
 0x233   : > { %v6421_v3 = vpop.eup %6420  ;;  %4894 = vst [vmem:[%s7477_s16 + $0xe0] sm:$0xff] %v4862_v28 }
 0x234   : > { %v6423_v47 = vpop.eup %6422  ;;  %v4865_v2 = vmul.f32 %v6421_v3, %v7565_v13 }
 0x235   : > { %v4863_v38 = vmul.f32 %v6423_v47, %v7569_v31 }
 0x236   : > { %4897 = vst [vmem:[%s7477_s16 + $0xf8] sm:$0xff] %v4865_v2 }
 0x237   : > { %4895 = vst [vmem:[%s7477_s16 + $0xe8] sm:$0xff] %v4863_v38 }
 0x238   : > { %6437 = shalt.err (!%p6434_p3)
}
 0x239   : > { %s6438_s13 = scalar_lea.hbm %s7607_s26, 4096  ;;  %s6442_s12 = scalar_lea.hbm %s7663_s6, 8192 }
 0x23a   : > { %p6439_p4 = scmp.ne.s32.totalorder %s7607_s26, %s6438_s13  ;;  %p6443_p9 = scmp.lt.u32.totalorder %s7607_s26, %s7663_s6 }
 0x23b   : > { %p6444_p10 = scmp.lt.u32.totalorder %s6442_s12, %s6438_s13  ;;  %p6446_p12 = scmp.lt.u32.totalorder %s6438_s13, %s7607_s26 }
 0x23c   : > { %p6440_p7 = pnand %p6439_p4, %p6565_p5 }
 0x23d   : > { %p6445_p11 = por %p6444_p10, %p6443_p9 }
 0x23e   : > { %p6441_p8 = pneg %p6440_p7 }
 0x23f   : > { %p6447_p13 = por %p6446_p12, %p6445_p11 }
 0x241   : > { %p6448_p0 = pnand %p6447_p13, %p6441_p8 }
 0x243   : > { %6451 = shalt.err (!%p6448_p0)
}
 0x244   : > { %s6490_s17 = smov 128   ;;  %s6491_s14 = smov 8  }
 0x245   : > { %6151 = dma.vmem_to_hbm [thread:$0]  (%p6565_p5), %s7609_s18, 4096, %s7607_s26, %s7616_s25, %s6490_s17, %s6490_s17, %s6491_s14  }
 0x246 PF: > { %p6157_p1 = scmp.ge.s32.totalorder %s6486_s24, 2  ;;  %s4927_s20 = sand.u32 1, %s6474_s21  }
 0x247   : > { %s4928_s28 = scalar_lea.sflag [#allocation3], %s4927_s20 }
 0x248   : > { %p6154_p2 = pnand %p6157_p1, %p6569_p6 }
 0x24a   : > { %6469 = dma.done.wait (!%p6154_p2), %s4928_s28, 4096  }
 0x24b   : > { %6471 = vsyncadd (!%p6154_p2), %s4928_s28, 4294963200  ;;  %p16_p3 = scmp.ge.s32.totalorder %s6552_s27, 4   ;;  %s7668_s21 = smov %s6478_s22 }
 0x24c   : > { %s7669_s22 = smov %s6482_s23  ;;  %s7670_s23 = smov %s6563_s30 }
 0x24d   : > { %s7671_s24 = smov %s6552_s27  ;;  %18 = sbr.rel (!%p16_p3) target bundleno = 3 (0x3), region = 90 }
 0x254   :  { %4933 = vsyncpa [#allocation3], 1 }
 0x255   :  { %4935 = vsyncpa [#allocation3 + $0x1], 1 }

</bundles_post_ra>
